<compile_context>
chip_gen: v7x
topology: tpu7x:2x2x1
jax: 0.10.0
libtpu: 0.0.40
codegen_flags: <defaults>
</compile_context>

<pallas_src>
import functools
import re

import jax
import jax.numpy as jnp
from jax import lax
from jax.experimental import pallas as pl
from jax.experimental.pallas import tpu as pltpu


def _pam_kernel(xt_ref, xres_ref, wbt_ref, bb_ref, wc_ref, bc_ref, wdt_ref,
                bd_ref, mask_ref, alpha_ref, out_ref,
                fbt_s, fc_s, fdt_s, *, N, N_pad, tq):
    q = pl.program_id(1)

    # Refresh the cached 1x1-conv features once per image (q == 0).  The q
    # axis is the innermost, sequential ("arbitrary") axis, so the scratch
    # stays valid for every query tile of the current batch element.
    @pl.when(q == 0)
    def _():
        xt = xt_ref[...]                                          # (N_pad, C) bf16
        # feat_b^T: (N_pad, C8) -- canonical (M,K)@(K,N) bf16 matmul, f32 acc.
        fbt_s[...] = (jnp.dot(xt, wbt_ref[...],
                              preferred_element_type=jnp.float32)
                      + bb_ref[...]).astype(fbt_s.dtype)
        # feat_c: (C8, N_pad) -- A @ B^T pattern (contract last dims), once/image.
        fc_s[...] = (lax.dot_general(
            wc_ref[...], xt, (((1,), (1,)), ((), ())),
            preferred_element_type=jnp.float32) + bc_ref[...]).astype(fc_s.dtype)
        # feat_d^T: (N_pad, C) -- canonical bf16 matmul.
        fdt_s[...] = (jnp.dot(xt, wdt_ref[...],
                              preferred_element_type=jnp.float32)
                      + bd_ref[...]).astype(fdt_s.dtype)

    q0 = pl.multiple_of(q * tq, tq)
    fb_t = fbt_s[pl.ds(q0, tq), :]                                # (tq, C8) bf16

    # energy[n, m] = feat_b[:, q0+n] . feat_c[:, m] -> (tq, N_pad), f32 accum.
    # Canonical matmul: no operand transpose on the vector-extended slot.
    energy = jnp.dot(fb_t, fc_s[...], preferred_element_type=jnp.float32)

    if N_pad != N:
        energy = energy + mask_ref[...]       # precomputed 0 / -1e30 key bias

    energy = energy - jnp.max(energy, axis=-1, keepdims=True)
    p = jnp.exp(energy)                                           # unnormalized f32
    l = jnp.sum(p, axis=-1, keepdims=True)                        # (tq, 1) row sums

    # PV on unnormalized bf16 probabilities, canonical matmul -> (tq, C).
    pv = jnp.dot(p.astype(jnp.bfloat16), fdt_s[...],
                 preferred_element_type=jnp.float32)

    # Deferred softmax normalization fused with alpha (reciprocal on EUP slot).
    scale = alpha_ref[0, 0] * pl.reciprocal(l, approx=True)       # (tq, 1)
    e_ct = (pv * scale).T                                         # small (tq,C)->(C,tq)
    out_ref[...] = (e_ct + xres_ref[...]).astype(out_ref.dtype)


def _tpu_tuning():
    """Returns (query_tile, vmem_limit_bytes) tuned per TPU generation."""
    kind = ""
    try:
        kind = jax.devices()[0].device_kind.lower()
    except Exception:
        pass
    m = re.search(r"(\d+)", kind)
    ver = int(m.group(1)) if m else 0
    if 0 < ver <= 5:
        return 128, 100 * 1024 * 1024     # v5e & older: 128-wide MXU, 128 MiB VMEM
    if ver >= 7:
        return 256, 48 * 1024 * 1024      # v7x: 256-wide MXU, 64 MiB VMEM per TC
    return 256, 100 * 1024 * 1024         # v6e / unknown: 256-wide MXU, 128 MiB


def position_attention(x_nchw, wb, bb, wc, bc, wd, bd, alpha, *, tq=None):
    """x_nchw: (B, C, H, W) float32. Returns (B, C, H, W) float32.

    C and C//8 should be multiples of 8 (true for DANet configs).
    """
    B, C, H, W = x_nchw.shape
    C8 = wb.shape[0]
    N = H * W

    tq_auto, vmem_limit = _tpu_tuning()
    if tq is None:
        tq = tq_auto
    tq = max(128, int(tq))
    tq = min(tq, pl.cdiv(N, 128) * 128)        # don't over-pad tiny inputs
    N_pad = pl.cdiv(N, tq) * tq
    nq = N_pad // tq

    x3 = x_nchw.reshape(B, C, N).astype(jnp.float32)
    if N_pad != N:
        x3 = jnp.pad(x3, ((0, 0), (0, 0), (0, N_pad - N)))
    # bf16 (N_pad, C) view of x used only by the per-image conv matmuls.
    xt_bf = jnp.transpose(x3, (0, 2, 1)).astype(jnp.bfloat16)

    wbt = jnp.asarray(wb, jnp.float32).T.astype(jnp.bfloat16)     # (C, C8)
    wcb = jnp.asarray(wc, jnp.float32).astype(jnp.bfloat16)       # (C8, C)
    wdt = jnp.asarray(wd, jnp.float32).T.astype(jnp.bfloat16)     # (C, C)
    bb_r = jnp.asarray(bb, jnp.float32).reshape(1, C8)
    bc_c = jnp.asarray(bc, jnp.float32).reshape(C8, 1)
    bd_r = jnp.asarray(bd, jnp.float32).reshape(1, C)
    alpha2 = jnp.asarray(alpha, jnp.float32).reshape(1, 1)

    # Additive key-padding bias: 0 for valid keys, -1e30 for padded columns.
    key_idx = jnp.arange(N_pad, dtype=jnp.int32)[None, :]
    mask_bias = jnp.where(key_idx < N, 0.0, -1e30).astype(jnp.float32)

    kernel = functools.partial(_pam_kernel, N=N, N_pad=N_pad, tq=tq)

    out3 = pl.pallas_call(
        kernel,
        out_shape=jax.ShapeDtypeStruct((B, C, N_pad), jnp.float32),
        grid_spec=pltpu.PrefetchScalarGridSpec(
            num_scalar_prefetch=0,
            grid=(B, nq),
            in_specs=[
                # bf16 x^T, full image, constant over q (resident per image).
                pl.BlockSpec((None, N_pad, C), lambda b, q: (b, 0, 0)),
                # f32 residual tile (exact alpha=0 path).
                pl.BlockSpec((None, C, tq), lambda b, q: (b, 0, q)),
                pl.BlockSpec((C, C8), lambda b, q: (0, 0)),         # wb^T
                pl.BlockSpec((1, C8), lambda b, q: (0, 0)),         # bb
                pl.BlockSpec((C8, C), lambda b, q: (0, 0)),         # wc
                pl.BlockSpec((C8, 1), lambda b, q: (0, 0)),         # bc
                pl.BlockSpec((C, C), lambda b, q: (0, 0)),          # wd^T
                pl.BlockSpec((1, C), lambda b, q: (0, 0)),          # bd
                pl.BlockSpec((1, N_pad), lambda b, q: (0, 0)),      # key mask bias
                pl.BlockSpec(memory_space=pltpu.MemorySpace.SMEM),  # alpha
            ],
            out_specs=pl.BlockSpec((None, C, tq), lambda b, q: (b, 0, q)),
            scratch_shapes=[
                pltpu.VMEM((N_pad, C8), jnp.bfloat16),   # feat_b^T
                pltpu.VMEM((C8, N_pad), jnp.bfloat16),   # feat_c
                pltpu.VMEM((N_pad, C), jnp.bfloat16),    # feat_d^T
            ],
        ),
        compiler_params=pltpu.CompilerParams(
            dimension_semantics=("parallel", "arbitrary"),
            vmem_limit_bytes=vmem_limit,
        ),
    )(xt_bf, x3, wbt, bb_r, wcb, bc_c, wdt, bd_r, mask_bias, alpha2)

    return out3[:, :, :N].reshape(B, C, H, W)


def _reference(x_nchw, wb, bb, wc, bc, wd, bd, alpha):
    # Pure-JAX reference mirroring the PyTorch forward exactly (f32 throughout).
    B, C, H, W = x_nchw.shape
    N = H * W
    x3 = x_nchw.reshape(B, C, N)
    fb = jnp.einsum("oc,bcn->bon", wb, x3) + bb[None, :, None]   # (B, C8, N)
    fc = jnp.einsum("oc,bcn->bon", wc, x3) + bc[None, :, None]   # (B, C8, N)
    fd = jnp.einsum("oc,bcn->bon", wd, x3) + bd[None, :, None]   # (B, C,  N)
    energy = jnp.einsum("bcn,bcm->bnm", fb, fc)                  # (B, N, N)
    attn = jax.nn.softmax(energy, axis=-1)
    e = jnp.einsum("bcn,bmn->bcm", fd, attn)                     # feat_d @ attn^T
    return (alpha * e + x3).reshape(B, C, H, W)


def _init_conv_params(key, out_ch, in_ch):
    # PyTorch Conv2d default init: U(-1/sqrt(fan_in), 1/sqrt(fan_in)) for 1x1.
    kw, kb = jax.random.split(key)
    bound = 1.0 / jnp.sqrt(in_ch)
    w = jax.random.uniform(kw, (out_ch, in_ch), jnp.float32, -bound, bound)
    b = jax.random.uniform(kb, (out_ch,), jnp.float32, -bound, bound)
    return w, b


if __name__ == "__main__":
    key = jax.random.PRNGKey(0)

    def run_case(case_key, B, C, H, W, tq=None):
        C8 = C // 8
        kx, kb_, kc_, kd_ = jax.random.split(case_key, 4)
        x = jax.random.normal(kx, (B, C, H, W), jnp.float32)
        wb, bb = _init_conv_params(kb_, C8, C)   # conv_b: 1x1, C -> C//8
        wc, bc = _init_conv_params(kc_, C8, C)   # conv_c: 1x1, C -> C//8
        wd, bd = _init_conv_params(kd_, C, C)    # conv_d: 1x1, C -> C
        # alpha=0 (module init) must be a bit-exact residual (f32 x path);
        # alpha=0.75 exercises the attention path (bf16 MXU operands, approx
        # reciprocal -> loose tolerance vs the f32 reference).
        for a, tol in ((jnp.float32(0.0), 1e-6), (jnp.float32(0.75), 1e-1)):
            out = jax.block_until_ready(
                position_attention(x, wb, bb, wc, bc, wd, bd, a, tq=tq))
            ref = _reference(x, wb, bb, wc, bc, wd, bd, a)
            assert out.shape == (B, C, H, W)
            err = float(jnp.max(jnp.abs(out - ref)))
            assert err < tol, f"mismatch vs reference: err={err} tol={tol}"

    k1, k2 = jax.random.split(key)
    # N = 256 with tq=128 -> two query tiles: exercises scratch reuse across q.
    run_case(k1, B=2, C=128, H=16, W=16, tq=128)
    # N = 99 -> padded to 128: exercises the additive key-mask path.
    run_case(k2, B=1, C=128, H=9, W=11)

    print("KERNEL_OK")
</pallas_src>

<mosaic_0001>
module attributes {stable_mosaic.version = 11 : i64} {
  func.func @_pam_kernel(%arg0: i32, %arg1: i32, %arg2: memref<1x256x128xbf16, #tpu.memory_space<vmem>>, %arg3: memref<1x128x128xf32, #tpu.memory_space<vmem>>, %arg4: memref<128x16xbf16, #tpu.memory_space<vmem>>, %arg5: memref<1x16xf32, #tpu.memory_space<vmem>>, %arg6: memref<16x128xbf16, #tpu.memory_space<vmem>>, %arg7: memref<16x1xf32, #tpu.memory_space<vmem>>, %arg8: memref<128x128xbf16, #tpu.memory_space<vmem>>, %arg9: memref<1x128xf32, #tpu.memory_space<vmem>>, %arg10: memref<1x256xf32, #tpu.memory_space<vmem>>, %arg11: memref<1x1xf32, #tpu.memory_space<smem>>, %arg12: memref<1x128x128xf32, #tpu.memory_space<vmem>>, %arg13: memref<256x16xbf16, #tpu.memory_space<vmem>>, %arg14: memref<16x256xbf16, #tpu.memory_space<vmem>>, %arg15: memref<256x128xbf16, #tpu.memory_space<vmem>>) attributes {dimension_semantics = [#tpu.dimension_semantics<parallel>, #tpu.dimension_semantics<arbitrary>], iteration_bounds = array<i64: 2, 2>, scalar_prefetch = 0 : i64, scratch_operands = 3 : i64, tpu.core_type = #tpu.core_type<tc>, window_params = [{transform_indices = @transform_0, window_bounds = array<i64: 1, 256, 128>}, {transform_indices = @transform_1, window_bounds = array<i64: 1, 128, 128>}, {pipeline_mode = #tpu.pipeline_mode<synchronous>, transform_indices = @transform_2, window_bounds = array<i64: 128, 16>}, {pipeline_mode = #tpu.pipeline_mode<synchronous>, transform_indices = @transform_3, window_bounds = array<i64: 1, 16>}, {pipeline_mode = #tpu.pipeline_mode<synchronous>, transform_indices = @transform_4, window_bounds = array<i64: 16, 128>}, {pipeline_mode = #tpu.pipeline_mode<synchronous>, transform_indices = @transform_5, window_bounds = array<i64: 16, 1>}, {pipeline_mode = #tpu.pipeline_mode<synchronous>, transform_indices = @transform_6, window_bounds = array<i64: 128, 128>}, {pipeline_mode = #tpu.pipeline_mode<synchronous>, transform_indices = @transform_7, window_bounds = array<i64: 1, 128>}, {pipeline_mode = #tpu.pipeline_mode<synchronous>, transform_indices = @transform_8, window_bounds = array<i64: 1, 256>}, {transform_indices = @transform_9, window_bounds = array<i64: 1, 1>}, {transform_indices = @transform_10, window_bounds = array<i64: 1, 128, 128>}]} {
    %c0_i32 = arith.constant 0 : i32
    %0 = arith.cmpi eq, %arg1, %c0_i32 : i32
    %1 = arith.extui %0 : i1 to i32
    %c0_i32_0 = arith.constant 0 : i32
    %2 = arith.cmpi ne, %1, %c0_i32_0 : i32
    scf.if %2 {
      %c0_16 = arith.constant 0 : index
      %c0_17 = arith.constant 0 : index
      %c0_18 = arith.constant 0 : index
      %32 = vector.load %arg2[%c0_16, %c0_17, %c0_18] : memref<1x256x128xbf16, #tpu.memory_space<vmem>>, vector<1x256x128xbf16>
      %33 = vector.shape_cast %32 : vector<1x256x128xbf16> to vector<256x128xbf16>
      %c0_19 = arith.constant 0 : index
      %c0_20 = arith.constant 0 : index
      %34 = vector.load %arg4[%c0_19, %c0_20] : memref<128x16xbf16, #tpu.memory_space<vmem>>, vector<128x16xbf16>
      %cst_21 = arith.constant dense<0.000000e+00> : vector<256x16xf32>
      %35 = tpu.matmul %33, %34, %cst_21 {dimension_numbers = #tpu.dot_dimension_numbers<[1], [0], [0], [1], [0, 0, 1, 1], [], []>} : vector<256x128xbf16>, vector<128x16xbf16>, vector<256x16xf32> -> vector<256x16xf32>
      %c0_22 = arith.constant 0 : index
      %c0_23 = arith.constant 0 : index
      %36 = vector.load %arg5[%c0_22, %c0_23] : memref<1x16xf32, #tpu.memory_space<vmem>>, vector<1x16xf32>
      %37 = vector.broadcast %36 : vector<1x16xf32> to vector<256x16xf32>
      %38 = arith.addf %35, %37 : vector<256x16xf32>
      %39 = arith.truncf %38 : vector<256x16xf32> to vector<256x16xbf16>
      %c0_24 = arith.constant 0 : index
      %c0_25 = arith.constant 0 : index
      %40 = vector.load %arg13[%c0_24, %c0_25] : memref<256x16xbf16, #tpu.memory_space<vmem>>, vector<256x16xbf16>
      tpu.vector_store %arg13[%c0_24, %c0_25], %39 {strides = array<i32>} : memref<256x16xbf16, #tpu.memory_space<vmem>>, vector<256x16xbf16>,
      %c0_26 = arith.constant 0 : index
      %c0_27 = arith.constant 0 : index
      %41 = vector.load %arg6[%c0_26, %c0_27] : memref<16x128xbf16, #tpu.memory_space<vmem>>, vector<16x128xbf16>
      %cst_28 = arith.constant dense<0.000000e+00> : vector<16x256xf32>
      %42 = tpu.matmul %41, %33, %cst_28 {dimension_numbers = #tpu.dot_dimension_numbers<[1], [1], [0], [0], [0, 0, 1, 0], [], []>} : vector<16x128xbf16>, vector<256x128xbf16>, vector<16x256xf32> -> vector<16x256xf32>
      %c0_29 = arith.constant 0 : index
      %c0_30 = arith.constant 0 : index
      %43 = vector.load %arg7[%c0_29, %c0_30] : memref<16x1xf32, #tpu.memory_space<vmem>>, vector<16x1xf32>
      %44 = vector.broadcast %43 : vector<16x1xf32> to vector<16x256xf32>
      %45 = arith.addf %42, %44 : vector<16x256xf32>
      %46 = arith.truncf %45 : vector<16x256xf32> to vector<16x256xbf16>
      %c0_31 = arith.constant 0 : index
      %c0_32 = arith.constant 0 : index
      %47 = vector.load %arg14[%c0_31, %c0_32] : memref<16x256xbf16, #tpu.memory_space<vmem>>, vector<16x256xbf16>
      tpu.vector_store %arg14[%c0_31, %c0_32], %46 {strides = array<i32>} : memref<16x256xbf16, #tpu.memory_space<vmem>>, vector<16x256xbf16>,
      %c0_33 = arith.constant 0 : index
      %c0_34 = arith.constant 0 : index
      %48 = vector.load %arg8[%c0_33, %c0_34] : memref<128x128xbf16, #tpu.memory_space<vmem>>, vector<128x128xbf16>
      %cst_35 = arith.constant dense<0.000000e+00> : vector<256x128xf32>
      %49 = tpu.matmul %33, %48, %cst_35 {dimension_numbers = #tpu.dot_dimension_numbers<[1], [0], [0], [1], [0, 0, 1, 1], [], []>} : vector<256x128xbf16>, vector<128x128xbf16>, vector<256x128xf32> -> vector<256x128xf32>
      %c0_36 = arith.constant 0 : index
      %c0_37 = arith.constant 0 : index
      %50 = vector.load %arg9[%c0_36, %c0_37] : memref<1x128xf32, #tpu.memory_space<vmem>>, vector<1x128xf32>
      %51 = vector.broadcast %50 : vector<1x128xf32> to vector<256x128xf32>
      %52 = arith.addf %49, %51 : vector<256x128xf32>
      %53 = arith.truncf %52 : vector<256x128xf32> to vector<256x128xbf16>
      %c0_38 = arith.constant 0 : index
      %c0_39 = arith.constant 0 : index
      %54 = vector.load %arg15[%c0_38, %c0_39] : memref<256x128xbf16, #tpu.memory_space<vmem>>, vector<256x128xbf16>
      tpu.vector_store %arg15[%c0_38, %c0_39], %53 {strides = array<i32>} : memref<256x128xbf16, #tpu.memory_space<vmem>>, vector<256x128xbf16>,
    } else {
    }
    %c128_i32 = arith.constant 128 : i32
    %3 = arith.muli %arg1, %c128_i32 : i32
    %4 = tpu.assume_multiple %3, 128 : i32
    %5 = arith.index_cast %4 : i32 to index
    %c0 = arith.constant 0 : index
    %6 = vector.load %arg13[%5, %c0] : memref<256x16xbf16, #tpu.memory_space<vmem>>, vector<128x16xbf16>
    %c0_1 = arith.constant 0 : index
    %c0_2 = arith.constant 0 : index
    %7 = vector.load %arg14[%c0_1, %c0_2] : memref<16x256xbf16, #tpu.memory_space<vmem>>, vector<16x256xbf16>
    %cst = arith.constant dense<0.000000e+00> : vector<128x256xf32>
    %8 = tpu.matmul %6, %7, %cst {dimension_numbers = #tpu.dot_dimension_numbers<[1], [0], [0], [1], [0, 0, 1, 1], [], []>} : vector<128x16xbf16>, vector<16x256xbf16>, vector<128x256xf32> -> vector<128x256xf32>
    %cst_3 = arith.constant dense<0xFF800000> : vector<128xf32>
    %9 = vector.multi_reduction <maximumf>, %8, %cst_3 [1] : vector<128x256xf32> to vector<128xf32>
    %10 = vector.shape_cast %9 : vector<128xf32> to vector<128x1xf32>
    %11 = vector.broadcast %10 : vector<128x1xf32> to vector<128x256xf32>
    %12 = arith.subf %8, %11 : vector<128x256xf32>
    %13 = math.exp %12 : vector<128x256xf32>
    %cst_4 = arith.constant dense<0.000000e+00> : vector<128xf32>
    %14 = vector.multi_reduction <add>, %13, %cst_4 [1] : vector<128x256xf32> to vector<128xf32>
    %15 = vector.shape_cast %14 : vector<128xf32> to vector<128x1xf32>
    %16 = arith.truncf %13 : vector<128x256xf32> to vector<128x256xbf16>
    %c0_5 = arith.constant 0 : index
    %c0_6 = arith.constant 0 : index
    %17 = vector.load %arg15[%c0_5, %c0_6] : memref<256x128xbf16, #tpu.memory_space<vmem>>, vector<256x128xbf16>
    %cst_7 = arith.constant dense<0.000000e+00> : vector<128x128xf32>
    %18 = tpu.matmul %16, %17, %cst_7 {dimension_numbers = #tpu.dot_dimension_numbers<[1], [0], [0], [1], [0, 0, 1, 1], [], []>} : vector<128x256xbf16>, vector<256x128xbf16>, vector<128x128xf32> -> vector<128x128xf32>
    %c0_8 = arith.constant 0 : index
    %c0_9 = arith.constant 0 : index
    %19 = memref.load %arg11[%c0_8, %c0_9] : memref<1x1xf32, #tpu.memory_space<smem>>
    %20 = tpu.reciprocal %15 {approx = true} : vector<128x1xf32> -> vector<128x1xf32>
    %21 = vector.broadcast %19 : f32 to vector<128x1xf32>
    %22 = arith.mulf %21, %20 : vector<128x1xf32>
    %23 = vector.broadcast %22 : vector<128x1xf32> to vector<128x128xf32>
    %24 = arith.mulf %18, %23 : vector<128x128xf32>
    %25 = tpu.transpose %24, [1, 0] : vector<128x128xf32> -> vector<128x128xf32>
    %c0_10 = arith.constant 0 : index
    %c0_11 = arith.constant 0 : index
    %c0_12 = arith.constant 0 : index
    %26 = vector.load %arg3[%c0_10, %c0_11, %c0_12] : memref<1x128x128xf32, #tpu.memory_space<vmem>>, vector<1x128x128xf32>
    %27 = vector.shape_cast %26 : vector<1x128x128xf32> to vector<128x128xf32>
    %28 = arith.addf %25, %27 : vector<128x128xf32>
    %c0_13 = arith.constant 0 : index
    %c0_14 = arith.constant 0 : index
    %c0_15 = arith.constant 0 : index
    %29 = vector.load %arg12[%c0_13, %c0_14, %c0_15] : memref<1x128x128xf32, #tpu.memory_space<vmem>>, vector<1x128x128xf32>
    %30 = vector.shape_cast %29 : vector<1x128x128xf32> to vector<128x128xf32>
    %31 = vector.shape_cast %28 : vector<128x128xf32> to vector<1x128x128xf32>
    tpu.vector_store %arg12[%c0_13, %c0_14, %c0_15], %31 {strides = array<i32>} : memref<1x128x128xf32, #tpu.memory_space<vmem>>, vector<1x128x128xf32>,
    return
  }
  func.func @transform_0(%arg0: i32, %arg1: i32) -> (i32, i32, i32) {
    %c0_i32 = arith.constant 0 : i32
    %c0_i32_0 = arith.constant 0 : i32
    %c0_i32_1 = arith.constant 0 : i32
    return %arg0, %c0_i32, %c0_i32_0 : i32, i32, i32
  }
  func.func @transform_1(%arg0: i32, %arg1: i32) -> (i32, i32, i32) {
    %c0_i32 = arith.constant 0 : i32
    %c0_i32_0 = arith.constant 0 : i32
    return %arg0, %c0_i32, %arg1 : i32, i32, i32
  }
  func.func @transform_2(%arg0: i32, %arg1: i32) -> (i32, i32) {
    %c0_i32 = arith.constant 0 : i32
    %c0_i32_0 = arith.constant 0 : i32
    %c0_i32_1 = arith.constant 0 : i32
    return %c0_i32, %c0_i32_0 : i32, i32
  }
  func.func @transform_3(%arg0: i32, %arg1: i32) -> (i32, i32) {
    %c0_i32 = arith.constant 0 : i32
    %c0_i32_0 = arith.constant 0 : i32
    %c0_i32_1 = arith.constant 0 : i32
    return %c0_i32, %c0_i32_0 : i32, i32
  }
  func.func @transform_4(%arg0: i32, %arg1: i32) -> (i32, i32) {
    %c0_i32 = arith.constant 0 : i32
    %c0_i32_0 = arith.constant 0 : i32
    %c0_i32_1 = arith.constant 0 : i32
    return %c0_i32, %c0_i32_0 : i32, i32
  }
  func.func @transform_5(%arg0: i32, %arg1: i32) -> (i32, i32) {
    %c0_i32 = arith.constant 0 : i32
    %c0_i32_0 = arith.constant 0 : i32
    %c0_i32_1 = arith.constant 0 : i32
    return %c0_i32, %c0_i32_0 : i32, i32
  }
  func.func @transform_6(%arg0: i32, %arg1: i32) -> (i32, i32) {
    %c0_i32 = arith.constant 0 : i32
    %c0_i32_0 = arith.constant 0 : i32
    %c0_i32_1 = arith.constant 0 : i32
    return %c0_i32, %c0_i32_0 : i32, i32
  }
  func.func @transform_7(%arg0: i32, %arg1: i32) -> (i32, i32) {
    %c0_i32 = arith.constant 0 : i32
    %c0_i32_0 = arith.constant 0 : i32
    %c0_i32_1 = arith.constant 0 : i32
    return %c0_i32, %c0_i32_0 : i32, i32
  }
  func.func @transform_8(%arg0: i32, %arg1: i32) -> (i32, i32) {
    %c0_i32 = arith.constant 0 : i32
    %c0_i32_0 = arith.constant 0 : i32
    %c0_i32_1 = arith.constant 0 : i32
    return %c0_i32, %c0_i32_0 : i32, i32
  }
  func.func @transform_9(%arg0: i32, %arg1: i32) -> (i32, i32) {
    %c0_i32 = arith.constant 0 : i32
    %c0_i32_0 = arith.constant 0 : i32
    %c0_i32_1 = arith.constant 0 : i32
    return %c0_i32, %c0_i32_0 : i32, i32
  }
  func.func @transform_10(%arg0: i32, %arg1: i32) -> (i32, i32, i32) {
    %c0_i32 = arith.constant 0 : i32
    %c0_i32_0 = arith.constant 0 : i32
    return %arg0, %c0_i32, %arg1 : i32, i32, i32
  }
}

</mosaic_0001>

<bundles_post_ra>
// kernel: tpu_custom_call.1
= control target key start
LH: loop header
LB: loop body
LE: loop exit
PB: predicated region body
PF: predicated region fallthrough
CT: control target
= control target key end

     0   :  { %s4001_s0 = inlined_call_operand.hbm [shape: bf16[2,256,128], index: 0, kind: input, shape index: {}]   ;;  %s4002_s1 = inlined_call_operand.hbm [shape: f32[2,128,256], index: 1, kind: input, shape index: {}]   ;;  %s4003_s2 = inlined_call_operand.hbm [shape: bf16[128,16], index: 2, kind: input, shape index: {}]   ;;  %s4004_s3 = inlined_call_operand.hbm [shape: f32[1,16], index: 3, kind: input, shape index: {}]   ;;  %s4005_s4 = inlined_call_operand.hbm [shape: bf16[16,128], index: 4, kind: input, shape index: {}]   ;;  %s4006_s5 = inlined_call_operand.hbm [shape: f32[16,1], index: 5, kind: input, shape index: {}]   ;;  %s4007_s6 = inlined_call_operand.hbm [shape: bf16[128,128], index: 6, kind: input, shape index: {}]   ;;  %s4008_s7 = inlined_call_operand.hbm [shape: f32[1,128], index: 7, kind: input, shape index: {}]   ;;  %s4009_s8 = inlined_call_operand.hbm [shape: f32[1,256], index: 8, kind: input, shape index: {}]   ;;  %s4010_s9 = inlined_call_operand.<no memory space> [shape: f32[1,1], index: 9, kind: input, shape index: {}]   ;;  %s4011_s10 = inlined_call_operand.hbm [shape: f32[2,128,256], index: 10, kind: output, shape index: {}]  }
   0x1   :  { %4031 = sst [smem:[#allocation35_spill]] %s4001_s0 }
   0x2   :  { %4032 = sst [smem:[#allocation36_spill]] %s4002_s1 }
   0x3   :  { %4033 = sst [smem:[#allocation37_spill]] %s4003_s2 }
   0x4   :  { %4034 = sst [smem:[#allocation38_spill]] %s4004_s3 }
   0x5   :  { %4035 = sst [smem:[#allocation39_spill]] %s4005_s4 }
   0x6   :  { %4036 = sst [smem:[#allocation40_spill]] %s4006_s5 }
   0x7   :  { %4037 = sst [smem:[#allocation41_spill]] %s4011_s10 }
   0x8   :  { %15 = sst [smem:[#allocation5]] %s4010_s9 }
   0x9   :  { %16 = vsyncpa [#allocation7], 0 }
   0xa   :  { %18 = vsyncpa [#allocation7 + $0x1], 0 }
   0xb   :  { %19 = vsyncpa [#allocation10], 0 }
   0xc   :  { %21 = vsyncpa [#allocation10 + $0x1], 0 }
   0xd   :  { %22 = vsyncpa [#allocation13], 0 }
   0xe   :  { %23 = vsyncpa [#allocation16], 0 }
   0xf   :  { %24 = vsyncpa [#allocation19], 0 }
  0x10   :  { %25 = vsyncpa [#allocation8], 0 }
  0x11   :  { %27 = vsyncpa [#allocation8 + $0x1], 0  ;;  %s3176_s15 = smov 0   ;;  %s3178_s16 = smov 0  }
  0x12   :  { %s3180_s17 = smov 0   ;;  %s3182_s18 = smov 0  }
  0x13   :  { %s3184_s19 = smov 0   ;;  %s3186_s9 = smov 0  }
  0x14   :  { %s3188_s20 = smov 0   ;;  %s3190_s21 = smov 0  }
  0x15   :  { %s3192_s22 = smov 0   ;;  %s3194_s23 = smov 0  }
  0x16   :  { %s3196_s24 = smov 0  }
  0x17 LB: > { %4038 = sst [smem:[#allocation29_spill]] %s3056_s15  ;;  %s3232_s25 = sadd.s32 4294967295, %s3096_s24   ;;  %s3096_s24 = sphi %s3196_s24, %s33_s24   ;;  %s3092_s23 = sphi %s3194_s23, %s4102_s23   ;;  %s3088_s22 = sphi %s3192_s22, %s4101_s22   ;;  %s3084_s21 = sphi %s3190_s21, %s4100_s21   ;;  %s3080_s20 = sphi %s3188_s20, %s4099_s20   ;;  %s3076_s9 = sphi %s3186_s9, %s4098_s9   ;;  %s3072_s19 = sphi %s3184_s19, %s4097_s19   ;;  %s3068_s18 = sphi %s3182_s18, %s4096_s18   ;;  %s3064_s17 = sphi %s3180_s17, %s4095_s17   ;;  %s3060_s16 = sphi %s3178_s16, %s4094_s16   ;;  %s3056_s15 = sphi %s3176_s15, %s4093_s15  }
  0x18   : > { %4039 = sst [smem:[#allocation30_spill]] %s3060_s16  ;;  %p2060_p0 = scmp.ge.s32.totalorder %s3096_s24, 1 }
  0x19   : > { %4040 = sst [smem:[#allocation31_spill]] %s3064_s17  ;;  %p4019_p1 = scmp.eq.s32.totalorder %s3232_s25, 0 }
  0x1a   : > { %4041 = sst [smem:[#allocation32_spill]] %s3080_s20  ;;  %p300_p2 = scmp.lt.s32.totalorder %s3096_s24, 5 }
  0x1b   : > { %4042 = sst [smem:[#allocation33_spill]] %s3084_s21  ;;  %s3098_s27 = smov [#allocation11]  }
  0x1c   : > { %p3237_p3 = pnand %p2060_p0, %p300_p2  ;;  %s312_s28 = sshll.u32 %s3098_s27, 4  ;;  %s3241_s28 = int_to_ptr.vmem [resolvable:$true] %s312_s28 }
  0x1d   : > { %s3099_s30 = smov [#allocation12]   ;;  %s3100_s12 = smov [#allocation15]  }
  0x1e   : > { %s4043_s26 = scalar_select %p3237_p3, 1, 0 }
  0x1f   : > { %p2414_p4 = pneg %p3237_p3  ;;  %s326_s11 = sshll.u32 %s3099_s30, 4  ;;  %s3251_s11 = int_to_ptr.vmem [resolvable:$true] %s326_s11 }
  0x20   : > { %4044 = sst [smem:[#allocation34_spill]] %s4043_s26  ;;  %s3253_s13 = sshll.u32 %s3100_s12, 4  ;;  %s350_s13 = int_to_ptr.vmem [resolvable:$true] %s3253_s13 }
  0x21   : > { %p3247_p5 = pnand %p2414_p4, %p4019_p1  ;;  %s4046_s2 = sld [smem:[#allocation37_spill]] }
  0x23   : > { %p3263_p7 = pneg %p3247_p5 }
  0x27   : > { %s2698_s27 = scalar_lea.hbm %s4046_s2, 1024 }
  0x28   : > { %p2699_p6 = scmp.ne.s32.totalorder %s4046_s2, %s2698_s27  ;;  %p2705_p10 = scmp.lt.u32.totalorder %s2698_s27, %s4046_s2 }
  0x2a   : > { %p2701_p8 = pnand %p3263_p7, %p2699_p6 }
  0x2c   : > { %p2702_p9 = pneg %p2701_p8 }
  0x2e   : > { %p2707_p11 = pnand %p2705_p10, %p2702_p9 }
  0x30   : > { %2710 = shalt.err (!%p2707_p11)
}
  0x31   : > { %s2711_s10 = scalar_lea.vmem %s3241_s28, 1024  ;;  %p2719_p2 = scmp.lt.s32.totalorder %s3241_s28, %s3241_s28 }
  0x32   : > { %p2712_p12 = scmp.ne.s32.totalorder %s3241_s28, %s2711_s10  ;;  %p2720_p4 = scmp.lt.s32.totalorder %s2711_s10, %s2711_s10 }
  0x34   : > { %p2714_p13 = pnand %p2712_p12, %p3263_p7  ;;  %p2721_p6 = por %p2720_p4, %p2719_p2 }
  0x36   : > { %p2715_p0 = pneg %p2714_p13 }
  0x38   : > { %p2722_p8 = pnand %p2721_p6, %p2715_p0 }
  0x3a   : > { %2725 = shalt.err (!%p2722_p8)
}
  0x3b   : > { %s4021_s20 = smov 64   ;;  %s4023_s21 = smov 4  }
  0x3c   : > { %2417 = dma.hbm_to_vmem [thread:$0]  (!%p3247_p5), %s4046_s2, 1024, %s3241_s28, [#allocation10], %s4021_s20, %s4021_s20, %s4023_s21  }
  0x3d   : > { %s4048_s3 = sld [smem:[#allocation38_spill]] }
  0x43   : > { %s2726_s10 = scalar_lea.hbm %s4048_s3, 16 }
  0x44   : > { %p2727_p9 = scmp.ne.s32.totalorder %s4048_s3, %s2726_s10  ;;  %p2733_p12 = scmp.lt.u32.totalorder %s2726_s10, %s4048_s3 }
  0x46   : > { %p2729_p10 = pnand %p2727_p9, %p3263_p7 }
  0x48   : > { %p2730_p11 = pneg %p2729_p10 }
  0x4a   : > { %p2735_p13 = pnand %p2733_p12, %p2730_p11 }
  0x4c   : > { %2738 = shalt.err (!%p2735_p13)
}
  0x4d   : > { %s2739_s28 = scalar_lea.vmem %s3251_s11, 16  ;;  %s2746_s1 = scalar_lea.vmem %s3251_s11, 32 }
  0x4e   : > { %p2740_p0 = scmp.ne.s32.totalorder %s3251_s11, %s2739_s28  ;;  %p2747_p6 = scmp.lt.s32.totalorder %s3251_s11, %s3251_s11 }
  0x4f   : > { %p2748_p8 = scmp.lt.s32.totalorder %s2746_s1, %s2739_s28 }
  0x50   : > { %p2742_p2 = pnand %p2740_p0, %p3263_p7 }
  0x51   : > { %p2749_p9 = por %p2748_p8, %p2747_p6 }
  0x52   : > { %p2743_p4 = pneg %p2742_p2 }
  0x54   : > { %p2750_p10 = pnand %p2749_p9, %p2743_p4 }
  0x56   : > { %2753 = shalt.err (!%p2750_p10)
}
  0x57   : > { %2420 = dma.hbm_to_vmem [thread:$0]  (!%p3247_p5), %s4048_s3, 16, %s3251_s11, [#allocation13]  }
  0x58   : > { %s4049_s5 = sld [smem:[#allocation40_spill]] }
  0x5e   : > { %s2754_s27 = scalar_lea.hbm %s4049_s5, 256 }
  0x5f   : > { %p2755_p11 = scmp.ne.s32.totalorder %s4049_s5, %s2754_s27  ;;  %p2761_p0 = scmp.lt.u32.totalorder %s2754_s27, %s4049_s5 }
  0x61   : > { %p2757_p12 = pnand %p2755_p11, %p3263_p7 }
  0x63   : > { %p2758_p13 = pneg %p2757_p12 }
  0x65   : > { %p2763_p2 = pnand %p2761_p0, %p2758_p13 }
  0x67   : > { %2766 = shalt.err (!%p2763_p2)
}
  0x68   : > { %s2767_s1 = scalar_lea.vmem %s350_s13, 256  ;;  %p2775_p9 = scmp.lt.s32.totalorder %s350_s13, %s350_s13 }
  0x69   : > { %p2768_p4 = scmp.ne.s32.totalorder %s350_s13, %s2767_s1  ;;  %p2776_p10 = scmp.lt.s32.totalorder %s2767_s1, %s2767_s1 }
  0x6b   : > { %p2770_p6 = pnand %p2768_p4, %p3263_p7  ;;  %p2777_p1 = por %p2776_p10, %p2775_p9 }
  0x6d   : > { %p2771_p8 = pneg %p2770_p6 }
  0x6f   : > { %p2778_p3 = pnand %p2777_p1, %p2771_p8 }
  0x71   : > { %2781 = shalt.err (!%p2778_p3)
}
  0x72   : > { %s4025_s11 = smov 128   ;;  %s4026_s15 = smov 8  }
  0x73   : > { %2426 = dma.hbm_to_vmem [thread:$0]  (!%p3247_p5), %s4049_s5, 256, %s350_s13, [#allocation16], %s4025_s11, %s4025_s11, %s4026_s15  }
  0x74   : > { %s3105_s14 = smov [#allocation18]   ;;  %s3106_s30 = smov [#allocation14]  }
  0x75   : > { %s376_s27 = sshll.u32 %s3105_s14, 4  ;;  %s336_s12 = sshll.u32 %s3106_s30, 4  ;;  %s377_s27 = int_to_ptr.vmem [resolvable:$true] %s376_s27  ;;  %s337_s12 = int_to_ptr.vmem [resolvable:$true] %s336_s12 }
  0x76   : > { %s2782_s1 = scalar_lea.hbm %s4008_s7, 16 }
  0x77   : > { %p2783_p1 = scmp.ne.s32.totalorder %s4008_s7, %s2782_s1  ;;  %p2789_p12 = scmp.lt.u32.totalorder %s2782_s1, %s4008_s7 }
  0x79   : > { %p2785_p3 = pnand %p2783_p1, %p3263_p7 }
  0x7b   : > { %p2786_p11 = pneg %p2785_p3 }
  0x7d   : > { %p2791_p13 = pnand %p2789_p12, %p2786_p11 }
  0x7f   : > { %2794 = shalt.err (!%p2791_p13)
}
  0x80   : > { %s2795_s13 = scalar_lea.vmem %s377_s27, 16  ;;  %s2802_s16 = scalar_lea.vmem %s377_s27, 32 }
  0x81   : > { %p2796_p0 = scmp.ne.s32.totalorder %s377_s27, %s2795_s13  ;;  %p2803_p6 = scmp.lt.s32.totalorder %s377_s27, %s377_s27 }
  0x82   : > { %p2804_p8 = scmp.lt.s32.totalorder %s2802_s16, %s2795_s13 }
  0x83   : > { %p2798_p2 = pnand %p2796_p0, %p3263_p7 }
  0x84   : > { %p2805_p9 = por %p2804_p8, %p2803_p6 }
  0x85   : > { %p2799_p4 = pneg %p2798_p2 }
  0x87   : > { %p2806_p10 = pnand %p2805_p9, %p2799_p4 }
  0x89   : > { %2809 = shalt.err (!%p2806_p10)
}
  0x8a   : > { %2432 = dma.hbm_to_vmem [thread:$0]  (!%p3247_p5), %s4008_s7, 16, %s377_s27, [#allocation19]  }
  0x8b   : > { %s4050_s4 = sld [smem:[#allocation39_spill]] }
  0x91   : > { %s2810_s17 = scalar_lea.hbm %s4050_s4, 128 }
  0x92   : > { %p2811_p1 = scmp.ne.s32.totalorder %s4050_s4, %s2810_s17  ;;  %p2817_p12 = scmp.lt.u32.totalorder %s2810_s17, %s4050_s4 }
  0x94   : > { %p2813_p3 = pnand %p2811_p1, %p3263_p7 }
  0x96   : > { %p2814_p11 = pneg %p2813_p3 }
  0x98   : > { %p2819_p13 = pnand %p2817_p12, %p2814_p11 }
  0x9a   : > { %2822 = shalt.err (!%p2819_p13)
}
  0x9b   : > { %s2823_s1 = scalar_lea.vmem %s337_s12, 128  ;;  %p2831_p6 = scmp.lt.s32.totalorder %s337_s12, %s337_s12 }
  0x9c   : > { %p2824_p0 = scmp.ne.s32.totalorder %s337_s12, %s2823_s1  ;;  %p2832_p8 = scmp.lt.s32.totalorder %s2823_s1, %s2823_s1 }
  0x9e   : > { %p2826_p2 = pnand %p2824_p0, %p3263_p7  ;;  %p2833_p9 = por %p2832_p8, %p2831_p6 }
  0xa0   : > { %p2827_p4 = pneg %p2826_p2 }
  0xa2   : > { %p2834_p10 = pnand %p2833_p9, %p2827_p4 }
  0xa4   : > { %2837 = shalt.err (!%p2834_p10)
}
  0xa5   : > { %s4051_s27 = smov 4   ;;  %s4052_s13 = smov 64  }
  0xa6   : > { %2423 = dma.hbm_to_vmem [thread:$0]  (!%p3247_p5), %s4050_s4, 128, %s337_s12, [#allocation13], %s4052_s13, %s4052_s13, %s4051_s27  }
  0xa7   : > { %s3107_s21 = smov [#allocation17]   ;;  %s3108_s3 = smov [#allocation20]  }
  0xa8   : > { %s362_s2 = sshll.u32 %s3107_s21, 4  ;;  %s387_s17 = sshll.u32 %s3108_s3, 4  ;;  %s363_s2 = int_to_ptr.vmem [resolvable:$true] %s362_s2  ;;  %s388_s17 = int_to_ptr.vmem [resolvable:$true] %s387_s17 }
  0xa9   : > { %s2838_s10 = scalar_lea.hbm %s4007_s6, 1024 }
  0xaa   : > { %p2839_p1 = scmp.ne.s32.totalorder %s4007_s6, %s2838_s10  ;;  %p2845_p12 = scmp.lt.u32.totalorder %s2838_s10, %s4007_s6 }
  0xac   : > { %p2841_p3 = pnand %p2839_p1, %p3263_p7 }
  0xae   : > { %p2842_p11 = pneg %p2841_p3 }
  0xb0   : > { %p2847_p13 = pnand %p2845_p12, %p2842_p11 }
  0xb2   : > { %2850 = shalt.err (!%p2847_p13)
}
  0xb3   : > { %s2851_s12 = scalar_lea.vmem %s363_s2, 1024  ;;  %p2859_p6 = scmp.lt.s32.totalorder %s363_s2, %s363_s2 }
  0xb4   : > { %p2852_p0 = scmp.ne.s32.totalorder %s363_s2, %s2851_s12  ;;  %p2860_p8 = scmp.lt.s32.totalorder %s2851_s12, %s2851_s12 }
  0xb6   : > { %p2854_p2 = pnand %p2852_p0, %p3263_p7  ;;  %p2861_p9 = por %p2860_p8, %p2859_p6 }
  0xb8   : > { %p2855_p4 = pneg %p2854_p2 }
  0xba   : > { %p2862_p10 = pnand %p2861_p9, %p2855_p4 }
  0xbc   : > { %2865 = shalt.err (!%p2862_p10)
}
  0xbd   : > { %2429 = dma.hbm_to_vmem [thread:$0]  (!%p3247_p5), %s4007_s6, 1024, %s363_s2, [#allocation16], %s4052_s13, %s4052_s13, %s4051_s27  }
  0xbe   : > { %s2866_s14 = scalar_lea.hbm %s4009_s8, 32 }
  0xbf   : > { %p2867_p1 = scmp.ne.s32.totalorder %s4009_s8, %s2866_s14  ;;  %p2873_p12 = scmp.lt.u32.totalorder %s2866_s14, %s4009_s8 }
  0xc1   : > { %p2869_p3 = pnand %p2867_p1, %p3263_p7 }
  0xc3   : > { %p2870_p11 = pneg %p2869_p3 }
  0xc5   : > { %p2875_p13 = pnand %p2873_p12, %p2870_p11 }
  0xc7   : > { %2878 = shalt.err (!%p2875_p13)
}
  0xc8   : > { %s2879_s16 = scalar_lea.vmem %s388_s17, 32  ;;  %p2887_p6 = scmp.lt.s32.totalorder %s388_s17, %s388_s17 }
  0xc9   : > { %p2880_p0 = scmp.ne.s32.totalorder %s388_s17, %s2879_s16  ;;  %p2888_p8 = scmp.lt.s32.totalorder %s2879_s16, %s2879_s16 }
  0xcb   : > { %p2882_p2 = pnand %p2880_p0, %p3263_p7  ;;  %p2889_p9 = por %p2888_p8, %p2887_p6 }
  0xcd   : > { %p2883_p4 = pneg %p2882_p2 }
  0xcf   : > { %p2890_p10 = pnand %p2889_p9, %p2883_p4 }
  0xd1   : > { %2893 = shalt.err (!%p2890_p10)
}
  0xd2   : > { %2435 = dma.hbm_to_vmem [thread:$0]  (!%p3247_p5), %s4009_s8, 32, %s388_s17, [#allocation19]  }
  0xd3   : > { %s42_s26 = sadd.s32 1, %s3088_s22  ;;  %s45_s29 = sadd.s32 1, %s3092_s23 }
  0xd4   : > { %p43_p7 = scmp.ge.s32.totalorder %s42_s26, 2  ;;  %s52_s11 = sadd.s32 1, %s3076_s9 }
  0xd5   : > { %p59_p1 = scmp.ne.s32.totalorder %s3076_s9, %s3072_s19  ;;  %p4028_p3 = scmp.eq.s32.totalorder %s3096_s24, 0 }
  0xd6   : > { %s4104_s26 = smov (%p43_p7, %s42_s26), 0  ;;  %s4106_s29 = smov (!%p43_p7, %s45_s29), %s3092_s23 }
  0xd7   : > { %p65_p11 = scmp.ne.s32.totalorder %s3072_s19, %s3068_s18  ;;  %p47_p12 = scmp.ge.s32.totalorder %s4106_s29, 2 }
  0xd8   : > { %s76_s20 = ssub.s32 %s3088_s22, %s4104_s26  ;;  %p3426_p13 = por %p4028_p3, %p59_p1 }
  0xd9   : > { %p4054_p5 = scmp.eq.s32.totalorder %s3232_s25, 0  ;;  %s4108_s29 = smov (%p47_p12, %s4106_s29), 0 }
  0xda   : > { %p4027_p2 = scmp.lt.s32.totalorder %s3096_s24, 4  ;;  %s401_s3 = sand.u32 1, %s3076_s9  }
  0xdb   : > { %p3432_p0 = por %p4054_p5, %p65_p11  ;;  %s49_s18 = ssub.s32 %s3092_s23, %s4108_s29 }
  0xdc   : > { %p50_p4 = scmp.eq.s32.totalorder %s49_s18, 0  ;;  %s3442_s14 = sor.u32 %s76_s20, %s49_s18 }
  0xdd   : > { %s2069_s30 = sshll.u32 %s401_s3, 7  ;;  %s2137_s28 = sshll.u32 %s3092_s23, 11 }
  0xde   : > { %s3446_s10 = scalar_select %p50_p4, %s3076_s9, %s52_s11  }
  0xdf   : > { %s4056_s0 = sld [smem:[#allocation35_spill]]  ;;  %s405_s12 = scalar_lea.vmem [#allocation6], %s2069_s30 }
  0xe0   : > { %s412_s15 = sshll.u32 %s405_s12, 4  ;;  %p3460_p8 = pnand %p4027_p2, %p3426_p13  ;;  %s3454_s15 = int_to_ptr.vmem [resolvable:$true] %s412_s15 }
  0xe1   : > { %s3464_s11 = scalar_lea.sflag [#allocation7], %s401_s3 }
  0xe2   : > { %p2896_p10 = pneg %p3460_p8 }
  0xe5   : > { %s3452_s2 = scalar_lea.hbm %s4056_s0, %s2137_s28  ;;  %s2899_s17 = scalar_lea.hbm %s4056_s0, 4096 }
  0xe6   : > { %s2894_s18 = scalar_lea.hbm %s3452_s2, 2048  ;;  %p2900_p11 = scmp.lt.u32.totalorder %s3452_s2, %s4056_s0 }
  0xe7   : > { %p2895_p9 = scmp.ne.s32.totalorder %s3452_s2, %s2894_s18  ;;  %p2901_p12 = scmp.lt.u32.totalorder %s2899_s17, %s2894_s18 }
  0xe8   : > { %p2903_p5 = scmp.lt.u32.totalorder %s2894_s18, %s3452_s2 }
  0xe9   : > { %p2897_p7 = pnand %p2896_p10, %p2895_p9  ;;  %p2902_p13 = por %p2901_p12, %p2900_p11 }
  0xeb   : > { %p2898_p1 = pneg %p2897_p7  ;;  %p2904_p4 = por %p2903_p5, %p2902_p13 }
  0xed   : > { %p2905_p2 = pnand %p2904_p4, %p2898_p1 }
  0xef   : > { %2908 = shalt.err (!%p2905_p2)
}
  0xf0   : > { %s2909_s3 = scalar_lea.vmem %s3454_s15, 2048  ;;  %s3109_s12 = smov [#allocation6]  }
  0xf1   : > { %p2910_p9 = scmp.ne.s32.totalorder %s3454_s15, %s2909_s3  ;;  %s2914_s30 = sshll.u32 %s3109_s12, 4  ;;  %s2915_s30 = int_to_ptr.vmem [resolvable:$false] %s2914_s30 }
  0xf2   : > { %s2916_s28 = scalar_lea.vmem %s2915_s30, 4096  ;;  %p2917_p6 = scmp.lt.s32.totalorder %s3454_s15, %s2915_s30 }
  0xf3   : > { %p2912_p7 = pnand %p2910_p9, %p2896_p10  ;;  %p2918_p11 = scmp.lt.s32.totalorder %s2916_s28, %s2909_s3 }
  0xf5   : > { %p2913_p3 = pneg %p2912_p7  ;;  %p2919_p12 = por %p2918_p11, %p2917_p6 }
  0xf7   : > { %p2920_p13 = pnand %p2919_p12, %p2913_p3 }
  0xf9   : > { %2923 = shalt.err (!%p2920_p13)
}
  0xfa   : > { %s4058_s18 = sld [smem:[#allocation31_spill]]  ;;  %s4059_s17 = sld [smem:[#allocation30_spill]] }
  0xfb   : > { %s4060_s1 = sld [smem:[#allocation29_spill]]  ;;  %s2059_s20 = sadd.s32 4294967294, %s3096_s24  }
  0xfc   : > { %2439 = dma.hbm_to_vmem [thread:$0]  (!%p3460_p8), %s3452_s2, 2048, %s3454_s15, %s3464_s11, %s4052_s13, %s4052_s13, %s4051_s27  }
  0xfd   : > { %p4061_p2 = scmp.eq.s32.totalorder %s3442_s14, 0  ;;  %p4062_p6 = scmp.eq.s32.totalorder %s3096_s24, 0 }
  0xfe   : > { %p287_p5 = scmp.eq.s32.totalorder %s3232_s25, 3  ;;  %p293_p4 = scmp.eq.s32.totalorder %s2059_s20, 3 }
  0xff   : > { %p4064_p9 = scmp.eq.s32.totalorder %s3232_s25, 0  ;;  %s422_s27 = sand.u32 1, %s3096_s24  }
 0x100   : > { %s80_s16 = sadd.s32 1, %s4058_s18  ;;  %p87_p3 = scmp.ne.s32.totalorder %s4058_s18, %s4059_s17 }
 0x101   : > { %s3502_s3 = scalar_select %p4061_p2, %s4058_s18, %s80_s16  }
 0x102   : > { %p3506_p10 = por %p87_p3, %p4062_p6  ;;  %p93_p1 = scmp.ne.s32.totalorder %s4059_s17, %s4060_s1 }
 0x103   : > { %p3520_p8 = por %p287_p5, %p87_p3  ;;  %s424_s2 = sand.u32 1, %s4058_s18  }
 0x104   : > { %p3515_p7 = por %p93_p1, %p4064_p9  ;;  %p3524_p11 = por %p293_p4, %p93_p1 }
 0x105   : > { %s4066_s13 = scalar_select %p3520_p8, 1, 0 }
 0x106   : > { %s4065_s15 = scalar_select %p3515_p7, 1, 0 }
 0x107   : > { %s4067_s14 = scalar_select %p3524_p11, 1, 0 }
 0x108   : > { %s2072_s11 = sshll.u32 %s424_s2, 7  ;;  %s2073_s30 = sshll.u32 %s3092_s23, 5 }
 0x109   : > { %s431_s28 = sadd.s32 %s3088_s22, %s2073_s30  ;;  %s426_s1 = scalar_lea.vmem [#allocation9], %s2072_s11 }
 0x10a   : > { %s2074_s17 = sshll.u32 %s431_s28, 7  ;;  %s434_s20 = sshll.u32 %s426_s1, 4  ;;  %s3536_s20 = int_to_ptr.vmem [resolvable:$true] %s434_s20 }
 0x10b   : > { %s4068_s4 = sld [smem:[#allocation36_spill]]  ;;  %p4069_p12 = scmp.lt.s32.totalorder %s3096_s24, 4 }
 0x10c   : > { %s3546_s2 = scalar_lea.sflag [#allocation10], %s422_s27 }
 0x10d   : > { %p3542_p13 = pnand %p4069_p12, %p3506_p10 }
 0x10f   : > { %p2926_p2 = pneg %p3542_p13 }
 0x111   : > { %s3534_s5 = scalar_lea.hbm %s4068_s4, %s2074_s17  ;;  %s2929_s12 = scalar_lea.hbm %s4068_s4, 8192 }
 0x112   : > { %s2924_s11 = scalar_lea.hbm %s3534_s5, 2048  ;;  %p2930_p10 = scmp.lt.u32.totalorder %s3534_s5, %s4068_s4 }
 0x113   : > { %p2925_p3 = scmp.ne.s32.totalorder %s3534_s5, %s2924_s11  ;;  %p2931_p5 = scmp.lt.u32.totalorder %s2929_s12, %s2924_s11 }
 0x114   : > { %p2933_p9 = scmp.lt.u32.totalorder %s2924_s11, %s3534_s5 }
 0x115   : > { %p2927_p6 = pnand %p2926_p2, %p2925_p3  ;;  %p2932_p4 = por %p2931_p5, %p2930_p10 }
 0x117   : > { %p2928_p1 = pneg %p2927_p6  ;;  %p2934_p12 = por %p2933_p9, %p2932_p4 }
 0x119   : > { %p2935_p11 = pnand %p2934_p12, %p2928_p1 }
 0x11b   : > { %2938 = shalt.err (!%p2935_p11)
}
 0x11c   : > { %s2939_s27 = scalar_lea.vmem %s3536_s20, 2048  ;;  %s3110_s1 = smov [#allocation9]  }
 0x11d   : > { %p2940_p3 = scmp.ne.s32.totalorder %s3536_s20, %s2939_s27  ;;  %s2944_s16 = sshll.u32 %s3110_s1, 4  ;;  %s2945_s16 = int_to_ptr.vmem [resolvable:$false] %s2944_s16 }
 0x11e   : > { %s2946_s0 = scalar_lea.vmem %s2945_s16, 4096  ;;  %p2947_p7 = scmp.lt.s32.totalorder %s3536_s20, %s2945_s16 }
 0x11f   : > { %p2942_p6 = pnand %p2940_p3, %p2926_p2  ;;  %p2948_p10 = scmp.lt.s32.totalorder %s2946_s0, %s2939_s27 }
 0x121   : > { %p2943_p8 = pneg %p2942_p6  ;;  %p2949_p5 = por %p2948_p10, %p2947_p7 }
 0x123   : > { %p2950_p4 = pnand %p2949_p5, %p2943_p8 }
 0x125   : > { %2953 = shalt.err (!%p2950_p4)
}
 0x126   : > { %s3111_s11 = smov 256   ;;  %s4071_s30 = smov 8  }
 0x127   : > { %s4072_s12 = smov 128   ;;  %s4073_s28 = sld [smem:[#allocation34_spill]] }
 0x128   : > { %2442 = dma.hbm_to_vmem [thread:$0]  (!%p3542_p13), %s3534_s5, 2048, %s3536_s20, %s3546_s2, %s3111_s11, %s4072_s12, %s4071_s30  }
 0x12d   : > { %p4074_p11 = scmp.ne.s32.totalorder %s4073_s28, 0 }
 0x12e   : > { %s448_s17 = sand.u32 (!%p4074_p11), 1, %s3072_s19  }
 0x12f   : > { %446 = sbr.rel (%p4074_p11) target bundleno = 1504 (0x5e0), region = 60  ;;  %s2076_s1 = sshll.u32 (!%p4074_p11), %s448_s17, 7 }
 0x130   : > { %s449_s27 = scalar_lea.sflag (!%p4074_p11), [#allocation7], %s448_s17  ;;  %s3579_s16 = scalar_lea.vmem (!%p4074_p11), [#allocation6], %s2076_s1 }
 0x136   : > { %3027 = dma.done.wait (%p3432_p0), %s449_s27, 2048  }
 0x137   : > { %3029 = vsyncadd (%p3432_p0), %s449_s27, 4294965248  ;;  %s4075_s18 = sld [smem:[#allocation30_spill]]  ;;  %s457_s5 = sand.u32 1, %s3232_s25  }
 0x138   : > { %s458_s0 = scalar_lea.sflag [#allocation10], %s457_s5  ;;  %p4076_p7 = scmp.ne.s32.totalorder %s4065_s15, 0 }
 0x13d   : > { %s459_s20 = sand.u32 1, %s4075_s18  }
 0x13e   : > { %s2077_s2 = sshll.u32 %s459_s20, 7 }
 0x13f   : > { %s3589_s11 = scalar_lea.vmem [#allocation9], %s2077_s2 }
 0x140   : > { %3031 = dma.done.wait (%p4076_p7), %s458_s0, 2048  }
 0x141   : > { %3033 = vsyncadd (%p4076_p7), %s458_s0, 4294965248  ;;  %p4077_p8 = scmp.eq.s32.totalorder %s3232_s25, 0 }
 0x143   : > { %3035 = dma.done.wait (%p4077_p8), [#allocation10], 1024   ;;  %p4078_p0 = pmov %p4077_p8 }
 0x145   : > { %3037 = vsyncadd (%p4078_p0), [#allocation10], 4294966272  ;;  %p4079_p13 = pmov %p4078_p0 }
 0x146   : > { %p4080_p2 = pmov %p4078_p0 }
 0x147   : > { %3039 = dma.done.wait (%p4079_p13), [#allocation13], 144  }
 0x148   : > { %3041 = vsyncadd (%p4080_p2), [#allocation13], 4294967152  ;;  %p4081_p1 = pmov %p4078_p0 }
 0x149   : > { %p4082_p9 = pmov %p4078_p0 }
 0x14a   : > { %3043 = dma.done.wait (%p4081_p1), [#allocation16], 1280  }
 0x14b   : > { %3045 = vsyncadd (%p4082_p9), [#allocation16], 4294966016  ;;  %p4083_p12 = pmov %p4078_p0 }
 0x14c   : > { %p4084_p3 = pmov %p4078_p0 }
 0x14d   : > { %3047 = dma.done.wait (%p4083_p12), [#allocation19], 48  }
 0x14e   : > { %3049 = vsyncadd (%p4084_p3), [#allocation19], 4294967248  ;;  %s3611_s21 = scalar_lea.vmem [#allocation21], %s2077_s2  ;;  %s4085_s15 = sld [smem:[#allocation32_spill]] }
 0x154   : > { %p2086_p6 = scmp.ne.s32.totalorder %s4085_s15, 0 }
 0x155   : > { %v2569_v0 = vld [vmem:[#allocation11] sm:$0xff] (!%p2086_p6)   ;;  %v2570_v1 = vld [vmem:[#allocation11 + $0x8] sm:$0xff] (!%p2086_p6)   ;;  %v3112_v2 = vmov (!%p2086_p6), 0   ;;  %v2571_v4 = vld [vmem:[#allocation11 + $0x10] sm:$0xff] (!%p2086_p6)   ;;  %vm912_vm0 = vcmask (!%p2086_p6), 130048  }
 0x156   : > { %535 = sbr.rel (%p2086_p6) target bundleno = 663 (0x297), region = 100  ;;  %2568 = vset.pattern.permute.xlu0 (!%p2086_p6), %v3112_v2  ;;  %2268 = vmatprep.subr.bf16.mxu1 (!%p2086_p6), %v2569_v0  ;;  %v2572_v3 = vld [vmem:[#allocation17] sm:$0xff] (!%p2086_p6)   ;;  %v2574_v5 = vld [vmem:[#allocation17 + $0x8] sm:$0xff] (!%p2086_p6)   ;;  %v2576_v6 = vld [vmem:[#allocation17 + $0x10] sm:$0xff] (!%p2086_p6)  }
 0x157   : > { %2269 = vmatpush3.bf16.msra.mxu1 (!%p2086_p6), %v2569_v0  ;;  %2316 = vmatprep.subr.bf16.mxu0 (!%p2086_p6), %v2572_v3  ;;  %v2573_v7 = vld [vmem:[#allocation11 + $0x18] sm:$0xff] (!%p2086_p6)   ;;  %v2575_v9 = vld [vmem:[#allocation11 + $0x20] sm:$0xff] (!%p2086_p6)   ;;  %v2577_v12 = vld [vmem:[#allocation11 + $0x28] sm:$0xff] (!%p2086_p6)  }
 0x158   : > { %2270 = vmatprep.subr.bf16.mxu1 (!%p2086_p6), %v2570_v1  ;;  %2317 = vmatpush3.bf16.msra.mxu0 (!%p2086_p6), %v2572_v3  ;;  %v2578_v8 = vld [vmem:[#allocation17 + $0x18] sm:$0xff] (!%p2086_p6)   ;;  %v2583_v10 = vld [vmem:[%s3579_s16] sm:$0xff] (!%p2086_p6)   ;;  %v2585_v15 = vld [vmem:[#allocation17 + $0x30] sm:$0xff] (!%p2086_p6)  }
 0x159   : > { %2318 = vmatprep.subr.bf16.mxu0 (!%p2086_p6), %v2574_v5  ;;  %v2580_v11 = vld [vmem:[#allocation17 + $0x20] sm:$0xff] (!%p2086_p6)   ;;  %2284 = vmatprep.mubr.bf16.mxu1 (!%p2086_p6), %v2583_v10  ;;  %v2582_v13 = vld [vmem:[#allocation17 + $0x28] sm:$0xff] (!%p2086_p6)   ;;  %v2579_v14 = vld [vmem:[#allocation11 + $0x30] sm:$0xff] (!%p2086_p6)  }
 0x15a   : > { %2332 = vmatprep.mubr.bf16.mxu0 (!%p2086_p6), %v2583_v10  ;;  %v2581_v16 = vld [vmem:[#allocation11 + $0x38] sm:$0xff] (!%p2086_p6)   ;;  %v2586_v18 = vld [vmem:[%s3579_s16 + $0x40] sm:$0xff] (!%p2086_p6)   ;;  %v2584_v19 = vld [vmem:[%s3579_s16 + $0x8] sm:$0xff] (!%p2086_p6)  }
 0x15b   : > { %2271 = vmatpush3.bf16.msra.mxu1 (!%p2086_p6), %v2570_v1  ;;  %v2587_v17 = vld [vmem:[#allocation17 + $0x38] sm:$0xff] (!%p2086_p6)   ;;  %v931_v21 = vld [vmem:[#allocation15] sm:$0xff] (!%p2086_p6)  ;;  %v2591_v25 = vld [vmem:[%s3579_s16 + $0x20] sm:$0xff] (!%p2086_p6)  }
 0x15c   : > { %2272 = vmatprep.subr.bf16.mxu1 (!%p2086_p6), %v2571_v4  ;;  %2319 = vmatpush3.bf16.msra.mxu0 (!%p2086_p6), %v2574_v5  ;;  %v2588_v20 = vld [vmem:[%s3579_s16 + $0x10] sm:$0xff] (!%p2086_p6)   ;;  %v2590_v23 = vld [vmem:[%s3579_s16 + $0x48] sm:$0xff] (!%p2086_p6)   ;;  %v2589_v24 = vld [vmem:[%s3579_s16 + $0x18] sm:$0xff] (!%p2086_p6)  }
 0x15d   : > { %2320 = vmatprep.subr.bf16.mxu0 %v2576_v6  ;;  %935 = vperm.xlu0 %2568, %v931_v21   ;;  %v932_v22 = vld [vmem:[#allocation15 + $0x8] sm:$0xff]  ;;  %v2592_v27 = vld [vmem:[%s3579_s16 + $0x28] sm:$0xff]   ;;  %v2597_v31 = vld [vmem:[%s3579_s16 + $0x60] sm:$0xff]  }
 0x15e   : > { %v2593_v26 = vld [vmem:[%s3579_s16 + $0x50] sm:$0xff]   ;;  %v2596_v29 = vld [vmem:[%s3579_s16 + $0x58] sm:$0xff]   ;;  %v2598_v32 = vld [vmem:[%s3579_s16 + $0x68] sm:$0xff]  }
 0x15f   : > { %2273 = vmatpush3.bf16.msra.mxu1 %v2571_v4  ;;  %v2594_v28 = vld [vmem:[%s3579_s16 + $0x30] sm:$0xff]   ;;  %v2595_v30 = vld [vmem:[%s3579_s16 + $0x38] sm:$0xff]   ;;  %v2601_v35 = vld [vmem:[#allocation14] sm:$0xff]  }
 0x160   : > { %2274 = vmatprep.subr.bf16.mxu1 %v2573_v7  ;;  %2321 = vmatpush3.bf16.msra.mxu0 %v2576_v6  ;;  %v2599_v33 = vld [vmem:[%s3579_s16 + $0x70] sm:$0xff]   ;;  %v2600_v34 = vld [vmem:[%s3579_s16 + $0x78] sm:$0xff]   ;;  %v3630_v36 = vld [vmem:[#allocation12] ss:$0 sm:$0xff] }
 0x161   : > { %2322 = vmatprep.subr.bf16.mxu0 %v2578_v8  ;;  %940 = vperm.xlu0 %2568, %v932_v22   ;;  %v3633_v40 = vld [vmem:[#allocation18] ss:$0 sm:$0xff] }
 0x163   : > { %2275 = vmatpush3.bf16.msra.mxu1 %v2573_v7 }
 0x164   : > { %2276 = vmatprep.subr.bf16.mxu1 %v2575_v9  ;;  %2323 = vmatpush3.bf16.msra.mxu0 %v2578_v8 }
 0x165   : > { %2324 = vmatprep.subr.bf16.mxu0 %v2580_v11 }
 0x167   : > { %2277 = vmatpush3.bf16.msra.mxu1 %v2575_v9 }
 0x168   : > { %2278 = vmatprep.subr.bf16.mxu1 %v2577_v12  ;;  %2325 = vmatpush3.bf16.msra.mxu0 %v2580_v11 }
 0x169   : > { %2326 = vmatprep.subr.bf16.mxu0 %v2582_v13 }
 0x16b   : > { %2279 = vmatpush3.bf16.msra.mxu1 %v2577_v12 }
 0x16c   : > { %2280 = vmatprep.subr.bf16.mxu1 %v2579_v14  ;;  %2327 = vmatpush3.bf16.msra.mxu0 %v2582_v13 }
 0x16d   : > { %2328 = vmatprep.subr.bf16.mxu0 %v2585_v15 }
 0x16f   : > { %2281 = vmatpush3.bf16.msra.mxu1 %v2579_v14 }
 0x170   : > { %2282 = vmatprep.subr.bf16.mxu1 %v2581_v16  ;;  %2329 = vmatpush3.bf16.msra.mxu0 %v2585_v15 }
 0x171   : > { %2330 = vmatprep.subr.bf16.mxu0 %v2587_v17 }
 0x173   : > { %2283 = vmatpush3.bf16.msra.mxu1 %v2581_v16 }
 0x174   : > { %2162 = vmatprep.subr.bf16.mxu1 %v2586_v18  ;;  %2331 = vmatpush3.bf16.msra.mxu0 %v2587_v17 }
 0x176   : > { %2285 = vmatmul.mubr.bf16.vlgmr.msra.gmra.mrb[0].mxu1 %v2584_v19 }
 0x177   : > { %2288 = vmatprep.mubr.bf16.mxu1 %v2588_v20  ;;  %2333 = vmatmul.mubr.bf16.vlgmr.msra.gmra.mrb[0].mxu0 %v2584_v19 }
 0x178   : > { %2336 = vmatprep.mubr.bf16.mxu0 %v2588_v20 }
 0x17c   : > { %2163 = vmatpush3.bf16.xpose.msra.mxu1 %v2583_v10 }
 0x17d   : > { %2164 = vmatprep.subr.bf16.mxu1 %v2590_v23 }
 0x17e   : > { %2289 = vmatmul.mubr.bf16.gmra.mrb[4].mxu1 %v2589_v24 }
 0x17f   : > { %2292 = vmatprep.mubr.bf16.mxu1 %v2591_v25  ;;  %2337 = vmatmul.mubr.bf16.gmra.mrb[4].mxu0 %v2589_v24 }
 0x180   : > { %2340 = vmatprep.mubr.bf16.mxu0 %v2591_v25 }
 0x184   : > { %2165 = vmatpush3.bf16.xpose.msra.mxu1 %v2584_v19 }
 0x185   : > { %2166 = vmatprep.subr.bf16.mxu1 %v2593_v26 }
 0x186   : > { %2293 = vmatmul.mubr.bf16.gmra.mrb[8].mxu1 %v2592_v27 }
 0x187   : > { %2296 = vmatprep.mubr.bf16.mxu1 %v2594_v28  ;;  %2341 = vmatmul.mubr.bf16.gmra.mrb[8].mxu0 %v2592_v27 }
 0x188   : > { %2344 = vmatprep.mubr.bf16.mxu0 %v2594_v28 }
 0x18c   : > { %2167 = vmatpush3.bf16.xpose.msra.mxu1 %v2588_v20 }
 0x18d   : > { %2168 = vmatprep.subr.bf16.mxu1 %v2596_v29 }
 0x18e   : > { %2297 = vmatmul.mubr.bf16.gmra.mrb[12].mxu1 %v2595_v30 }
 0x18f   : > { %2300 = vmatprep.mubr.bf16.mxu1 %v2586_v18  ;;  %2345 = vmatmul.mubr.bf16.gmra.mrb[12].mxu0 %v2595_v30 }
 0x190   : > { %2348 = vmatprep.mubr.bf16.mxu0 %v2586_v18 }
 0x194   : > { %2169 = vmatpush3.bf16.xpose.msra.mxu1 %v2589_v24 }
 0x195   : > { %2170 = vmatprep.subr.bf16.mxu1 %v2597_v31 }
 0x196   : > { %2301 = vmatmul.mubr.bf16.gmra.mrb[16].mxu1 %v2590_v23 }
 0x197   : > { %2304 = vmatprep.mubr.bf16.mxu1 %v2593_v26  ;;  %2349 = vmatmul.mubr.bf16.gmra.mrb[16].mxu0 %v2590_v23 }
 0x198   : > { %2352 = vmatprep.mubr.bf16.mxu0 %v2593_v26 }
 0x19c   : > { %2171 = vmatpush3.bf16.xpose.msra.mxu1 %v2591_v25 }
 0x19d   : > { %2172 = vmatprep.subr.bf16.mxu1 %v2598_v32 }
 0x19e   : > { %2305 = vmatmul.mubr.bf16.gmra.mrb[20].mxu1 %v2596_v29 }
 0x19f   : > { %2308 = vmatprep.mubr.bf16.mxu1 %v2597_v31  ;;  %2353 = vmatmul.mubr.bf16.gmra.mrb[20].mxu0 %v2596_v29 }
 0x1a0   : > { %2356 = vmatprep.mubr.bf16.mxu0 %v2597_v31 }
 0x1a4   : > { %2173 = vmatpush3.bf16.xpose.msra.mxu1 %v2592_v27 }
 0x1a5   : > { %2174 = vmatprep.subr.bf16.mxu1 %v2599_v33 }
 0x1a6   : > { %2309 = vmatmul.mubr.bf16.gmra.mrb[24].mxu1 %v2598_v32 }
 0x1a7   : > { %2312 = vmatprep.mubr.bf16.mxu1 %v2599_v33  ;;  %2357 = vmatmul.mubr.bf16.gmra.mrb[24].mxu0 %v2598_v32 }
 0x1a8   : > { %2360 = vmatprep.mubr.bf16.mxu0 %v2599_v33 }
 0x1ac   : > { %2175 = vmatpush3.bf16.xpose.msra.mxu1 %v2594_v28 }
 0x1ad   : > { %2176 = vmatprep.subr.bf16.mxu1 %v2600_v34 }
 0x1ae   : > { %2313 = vmatmul.mubr.bf16.gmra.mrb[28].mxu1 %v2600_v34 }
 0x1af   : > { %2178 = vmatprep.mubr.bf16.mxu1 %v2601_v35  ;;  %2361 = vmatmul.mubr.bf16.gmra.mrb[28].mxu0 %v2600_v34 }
 0x1b4   : > { %2177 = vmatpush3.bf16.xpose.msra.mxu1 %v2595_v30 }
 0x1bb   : > { %2179 = vmatmul.mubr.bf16.vlgmr.msra.gmra.mrb[32].mxu1 %v2601_v35 }
 0x249   : > { %v2286_v37 = vpop.f32.mrb[0].mxu1 }
 0x24a   : > { %v778_v38 = vadd.f32 %v2286_v37, %v3630_v36  ;;  %v769_v39 = vpop.f32.mrb[1].mxu1  ;;  %v2334_v45 = vpop.f32.mrb[0].mxu0 }
 0x24b   : > { %v770_v41 = vadd.f32 %v3630_v36, %v769_v39  ;;  %v2287_v42 = vpop.f32.mrb[2].mxu1  ;;  %v1110_v47 = vadd.f32 %v2334_v45, %v3633_v40  ;;  %v1101_v48 = vpop.f32.mrb[1].mxu0 }
 0x24c   : > { %v781_v43 = vadd.f32 %v2287_v42, %v3630_v36  ;;  %v772_v44 = vpop.f32.mrb[3].mxu1  ;;  %v1102_v50 = vadd.f32 %v3633_v40, %v1101_v48  ;;  %v2335_v51 = vpop.f32.mrb[2].mxu0 }
 0x24d   : > { %v773_v46 = vadd.f32 %v3630_v36, %v772_v44  ;;  %v1113_v53 = vadd.f32 %v2335_v51, %v3633_v40  ;;  %v1104_v54 = vpop.f32.mrb[3].mxu0 }
 0x24e   : > { %v897_v49 = vpack.c.bf16 %v781_v43, %v778_v38  ;;  %v1105_v55 = vadd.f32 %v3633_v40, %v1104_v54 }
 0x24f   : > { %v896_v52 = vpack.c.bf16 %v773_v46, %v770_v41  ;;  %v1229_v57 = vpack.c.bf16 %v1113_v53, %v1110_v47 }
 0x250   : > { %914 = vst.msk [vmem:[#allocation2 + $0x8] sm:$0xff] %vm912_vm0, %v897_v49  ;;  %v1228_v60 = vpack.c.bf16 %v1105_v55, %v1102_v50 }
 0x251   : > { %913 = vst.msk [vmem:[#allocation2] sm:$0xff] %vm912_vm0, %v896_v52  ;;  %v2290_v56 = vpop.f32.mrb[4].mxu1  ;;  %1245 = vst [vmem:[#allocation4 + $0x8] sm:$0xff] %v1229_v57 }
 0x252   : > { %v794_v58 = vadd.f32 %v2290_v56, %v3630_v36  ;;  %v785_v59 = vpop.f32.mrb[5].mxu1  ;;  %1244 = vst [vmem:[#allocation4] sm:$0xff] %v1228_v60  ;;  %v2338_v1 = vpop.f32.mrb[4].mxu0 }
 0x253   : > { %v786_v61 = vadd.f32 %v3630_v36, %v785_v59  ;;  %v2291_v62 = vpop.f32.mrb[6].mxu1  ;;  %v1126_v3 = vadd.f32 %v2338_v1, %v3633_v40  ;;  %v1117_v4 = vpop.f32.mrb[5].mxu0 }
 0x254   : > { %v797_v63 = vadd.f32 %v2291_v62, %v3630_v36  ;;  %v788_v0 = vpop.f32.mrb[7].mxu1  ;;  %v1118_v6 = vadd.f32 %v3633_v40, %v1117_v4  ;;  %v2339_v7 = vpop.f32.mrb[6].mxu0 }
 0x255   : > { %v789_v2 = vadd.f32 %v3630_v36, %v788_v0  ;;  %v1129_v9 = vadd.f32 %v2339_v7, %v3633_v40  ;;  %v1120_v10 = vpop.f32.mrb[7].mxu0 }
 0x256   : > { %v899_v5 = vpack.c.bf16 %v797_v63, %v794_v58  ;;  %v1121_v11 = vadd.f32 %v3633_v40, %v1120_v10 }
 0x257   : > { %v898_v8 = vpack.c.bf16 %v789_v2, %v786_v61  ;;  %v1231_v13 = vpack.c.bf16 %v1129_v9, %v1126_v3 }
 0x258   : > { %916 = vst.msk [vmem:[#allocation2 + $0x18] sm:$0xff] %vm912_vm0, %v899_v5  ;;  %v1230_v16 = vpack.c.bf16 %v1121_v11, %v1118_v6 }
 0x259   : > { %915 = vst.msk [vmem:[#allocation2 + $0x10] sm:$0xff] %vm912_vm0, %v898_v8  ;;  %v2294_v12 = vpop.f32.mrb[8].mxu1  ;;  %1247 = vst [vmem:[#allocation4 + $0x18] sm:$0xff] %v1231_v13 }
 0x25a   : > { %v810_v14 = vadd.f32 %v2294_v12, %v3630_v36  ;;  %v801_v15 = vpop.f32.mrb[9].mxu1  ;;  %1246 = vst [vmem:[#allocation4 + $0x10] sm:$0xff] %v1230_v16  ;;  %v2342_v21 = vpop.f32.mrb[8].mxu0 }
 0x25b   : > { %v802_v17 = vadd.f32 %v3630_v36, %v801_v15  ;;  %v2295_v18 = vpop.f32.mrb[10].mxu1  ;;  %v1142_v23 = vadd.f32 %v2342_v21, %v3633_v40  ;;  %v1133_v24 = vpop.f32.mrb[9].mxu0 }
 0x25c   : > { %v813_v19 = vadd.f32 %v2295_v18, %v3630_v36  ;;  %v804_v20 = vpop.f32.mrb[11].mxu1  ;;  %v1134_v26 = vadd.f32 %v3633_v40, %v1133_v24  ;;  %v2343_v27 = vpop.f32.mrb[10].mxu0 }
 0x25d   : > { %v805_v22 = vadd.f32 %v3630_v36, %v804_v20  ;;  %v1145_v29 = vadd.f32 %v2343_v27, %v3633_v40  ;;  %v1136_v30 = vpop.f32.mrb[11].mxu0 }
 0x25e   : > { %v901_v25 = vpack.c.bf16 %v813_v19, %v810_v14  ;;  %v1137_v31 = vadd.f32 %v3633_v40, %v1136_v30 }
 0x25f   : > { %v900_v28 = vpack.c.bf16 %v805_v22, %v802_v17  ;;  %v1233_v33 = vpack.c.bf16 %v1145_v29, %v1142_v23 }
 0x260   : > { %918 = vst.msk [vmem:[#allocation2 + $0x28] sm:$0xff] %vm912_vm0, %v901_v25  ;;  %v1232_v37 = vpack.c.bf16 %v1137_v31, %v1134_v26 }
 0x261   : > { %917 = vst.msk [vmem:[#allocation2 + $0x20] sm:$0xff] %vm912_vm0, %v900_v28  ;;  %v2298_v32 = vpop.f32.mrb[12].mxu1  ;;  %1249 = vst [vmem:[#allocation4 + $0x28] sm:$0xff] %v1233_v33 }
 0x262   : > { %v826_v34 = vadd.f32 %v2298_v32, %v3630_v36  ;;  %v817_v35 = vpop.f32.mrb[13].mxu1  ;;  %1248 = vst [vmem:[#allocation4 + $0x20] sm:$0xff] %v1232_v37  ;;  %v2346_v43 = vpop.f32.mrb[12].mxu0 }
 0x263   : > { %v818_v38 = vadd.f32 %v3630_v36, %v817_v35  ;;  %v2299_v39 = vpop.f32.mrb[14].mxu1  ;;  %v1158_v45 = vadd.f32 %v2346_v43, %v3633_v40  ;;  %v1149_v46 = vpop.f32.mrb[13].mxu0 }
 0x264   : > { %v829_v41 = vadd.f32 %v2299_v39, %v3630_v36  ;;  %v820_v42 = vpop.f32.mrb[15].mxu1  ;;  %v1150_v48 = vadd.f32 %v3633_v40, %v1149_v46  ;;  %v2347_v49 = vpop.f32.mrb[14].mxu0 }
 0x265   : > { %v821_v44 = vadd.f32 %v3630_v36, %v820_v42  ;;  %v1161_v51 = vadd.f32 %v2347_v49, %v3633_v40  ;;  %v1152_v52 = vpop.f32.mrb[15].mxu0 }
 0x266   : > { %v903_v47 = vpack.c.bf16 %v829_v41, %v826_v34  ;;  %v1153_v53 = vadd.f32 %v3633_v40, %v1152_v52 }
 0x267   : > { %v902_v50 = vpack.c.bf16 %v821_v44, %v818_v38  ;;  %v1235_v55 = vpack.c.bf16 %v1161_v51, %v1158_v45 }
 0x268   : > { %920 = vst.msk [vmem:[#allocation2 + $0x38] sm:$0xff] %vm912_vm0, %v903_v47  ;;  %v1234_v58 = vpack.c.bf16 %v1153_v53, %v1150_v48 }
 0x269   : > { %919 = vst.msk [vmem:[#allocation2 + $0x30] sm:$0xff] %vm912_vm0, %v902_v50  ;;  %v2302_v54 = vpop.f32.mrb[16].mxu1  ;;  %1251 = vst [vmem:[#allocation4 + $0x38] sm:$0xff] %v1235_v55 }
 0x26a   : > { %v842_v56 = vadd.f32 %v2302_v54, %v3630_v36  ;;  %v833_v57 = vpop.f32.mrb[17].mxu1  ;;  %1250 = vst [vmem:[#allocation4 + $0x30] sm:$0xff] %v1234_v58  ;;  %v2350_v63 = vpop.f32.mrb[16].mxu0 }
 0x26b   : > { %v834_v59 = vadd.f32 %v3630_v36, %v833_v57  ;;  %v2303_v60 = vpop.f32.mrb[18].mxu1  ;;  %v1174_v1 = vadd.f32 %v2350_v63, %v3633_v40  ;;  %v1165_v2 = vpop.f32.mrb[17].mxu0 }
 0x26c   : > { %v845_v61 = vadd.f32 %v2303_v60, %v3630_v36  ;;  %v836_v62 = vpop.f32.mrb[19].mxu1  ;;  %v1166_v4 = vadd.f32 %v3633_v40, %v1165_v2  ;;  %v2351_v5 = vpop.f32.mrb[18].mxu0 }
 0x26d   : > { %v837_v0 = vadd.f32 %v3630_v36, %v836_v62  ;;  %v1177_v7 = vadd.f32 %v2351_v5, %v3633_v40  ;;  %v1168_v8 = vpop.f32.mrb[19].mxu0 }
 0x26e   : > { %v905_v3 = vpack.c.bf16 %v845_v61, %v842_v56  ;;  %v1169_v9 = vadd.f32 %v3633_v40, %v1168_v8 }
 0x26f   : > { %v904_v6 = vpack.c.bf16 %v837_v0, %v834_v59  ;;  %v1237_v11 = vpack.c.bf16 %v1177_v7, %v1174_v1 }
 0x270   : > { %922 = vst.msk [vmem:[#allocation2 + $0x48] sm:$0xff] %vm912_vm0, %v905_v3  ;;  %v1236_v14 = vpack.c.bf16 %v1169_v9, %v1166_v4  ;;  %v936_v9 = vpop.permute.xlu0 %935 }
 0x271   : > { %921 = vst.msk [vmem:[#allocation2 + $0x40] sm:$0xff] %vm912_vm0, %v904_v6  ;;  %v2306_v10 = vpop.f32.mrb[20].mxu1  ;;  %1253 = vst [vmem:[#allocation4 + $0x48] sm:$0xff] %v1237_v11 }
 0x272   : > { %v858_v12 = vadd.f32 %v2306_v10, %v3630_v36  ;;  %v849_v13 = vpop.f32.mrb[21].mxu1  ;;  %1252 = vst [vmem:[#allocation4 + $0x40] sm:$0xff] %v1236_v14  ;;  %v2354_v19 = vpop.f32.mrb[20].mxu0 }
 0x273   : > { %v850_v15 = vadd.f32 %v3630_v36, %v849_v13  ;;  %v2307_v16 = vpop.f32.mrb[22].mxu1  ;;  %v1190_v21 = vadd.f32 %v2354_v19, %v3633_v40  ;;  %v1181_v22 = vpop.f32.mrb[21].mxu0 }
 0x274   : > { %v861_v17 = vadd.f32 %v2307_v16, %v3630_v36  ;;  %v852_v18 = vpop.f32.mrb[23].mxu1  ;;  %v1182_v24 = vadd.f32 %v3633_v40, %v1181_v22  ;;  %v2355_v25 = vpop.f32.mrb[22].mxu0 }
 0x275   : > { %v853_v20 = vadd.f32 %v3630_v36, %v852_v18  ;;  %v1193_v27 = vadd.f32 %v2355_v25, %v3633_v40  ;;  %v1184_v28 = vpop.f32.mrb[23].mxu0 }
 0x276   : > { %v907_v23 = vpack.c.bf16 %v861_v17, %v858_v12  ;;  %v1185_v29 = vadd.f32 %v3633_v40, %v1184_v28  ;;  %v941_v12 = vpop.permute.xlu0 %940 }
 0x277   : > { %v906_v26 = vpack.c.bf16 %v853_v20, %v850_v15  ;;  %v1239_v31 = vpack.c.bf16 %v1193_v27, %v1190_v21 }
 0x278   : > { %924 = vst.msk [vmem:[#allocation2 + $0x58] sm:$0xff] %vm912_vm0, %v907_v23  ;;  %v1238_v34 = vpack.c.bf16 %v1185_v29, %v1182_v24 }
 0x279   : > { %923 = vst.msk [vmem:[#allocation2 + $0x50] sm:$0xff] %vm912_vm0, %v906_v26  ;;  %v2310_v30 = vpop.f32.mrb[24].mxu1  ;;  %1255 = vst [vmem:[#allocation4 + $0x58] sm:$0xff] %v1239_v31 }
 0x27a   : > { %v874_v32 = vadd.f32 %v2310_v30, %v3630_v36  ;;  %v865_v33 = vpop.f32.mrb[25].mxu1  ;;  %1254 = vst [vmem:[#allocation4 + $0x50] sm:$0xff] %v1238_v34  ;;  %v2358_v41 = vpop.f32.mrb[24].mxu0 }
 0x27b   : > { %v866_v35 = vadd.f32 %v3630_v36, %v865_v33  ;;  %v2311_v37 = vpop.f32.mrb[26].mxu1  ;;  %v1206_v43 = vadd.f32 %v2358_v41, %v3633_v40  ;;  %v1197_v44 = vpop.f32.mrb[25].mxu0 }
 0x27c   : > { %v877_v38 = vadd.f32 %v2311_v37, %v3630_v36  ;;  %v868_v39 = vpop.f32.mrb[27].mxu1  ;;  %v1198_v46 = vadd.f32 %v3633_v40, %v1197_v44  ;;  %v2359_v47 = vpop.f32.mrb[26].mxu0 }
 0x27d   : > { %v869_v42 = vadd.f32 %v3630_v36, %v868_v39  ;;  %v1209_v49 = vadd.f32 %v2359_v47, %v3633_v40  ;;  %v1200_v50 = vpop.f32.mrb[27].mxu0 }
 0x27e   : > { %v909_v45 = vpack.c.bf16 %v877_v38, %v874_v32  ;;  %v1201_v51 = vadd.f32 %v3633_v40, %v1200_v50 }
 0x27f   : > { %v908_v48 = vpack.c.bf16 %v869_v42, %v866_v35  ;;  %v1241_v53 = vpack.c.bf16 %v1209_v49, %v1206_v43 }
 0x280   : > { %926 = vst.msk [vmem:[#allocation2 + $0x68] sm:$0xff] %vm912_vm0, %v909_v45  ;;  %v1240_v56 = vpack.c.bf16 %v1201_v51, %v1198_v46 }
 0x281   : > { %925 = vst.msk [vmem:[#allocation2 + $0x60] sm:$0xff] %vm912_vm0, %v908_v48  ;;  %v2314_v52 = vpop.f32.mrb[28].mxu1  ;;  %1257 = vst [vmem:[#allocation4 + $0x68] sm:$0xff] %v1241_v53 }
 0x282   : > { %v890_v54 = vadd.f32 %v2314_v52, %v3630_v36  ;;  %v881_v55 = vpop.f32.mrb[29].mxu1  ;;  %1256 = vst [vmem:[#allocation4 + $0x60] sm:$0xff] %v1240_v56  ;;  %v2362_v61 = vpop.f32.mrb[28].mxu0 }
 0x283   : > { %v882_v57 = vadd.f32 %v3630_v36, %v881_v55  ;;  %v2315_v58 = vpop.f32.mrb[30].mxu1  ;;  %v1222_v63 = vadd.f32 %v2362_v61, %v3633_v40  ;;  %v1213_v0 = vpop.f32.mrb[29].mxu0 }
 0x284   : > { %v893_v59 = vadd.f32 %v2315_v58, %v3630_v36  ;;  %v884_v60 = vpop.f32.mrb[31].mxu1  ;;  %v1214_v2 = vadd.f32 %v3633_v40, %v1213_v0  ;;  %v2363_v3 = vpop.f32.mrb[30].mxu0 }
 0x285   : > { %v885_v62 = vadd.f32 %v3630_v36, %v884_v60  ;;  %v1225_v5 = vadd.f32 %v2363_v3, %v3633_v40  ;;  %v1216_v6 = vpop.f32.mrb[31].mxu0 }
 0x286   : > { %v911_v1 = vpack.c.bf16 %v893_v59, %v890_v54  ;;  %v1217_v7 = vadd.f32 %v3633_v40, %v1216_v6 }
 0x287   : > { %v910_v4 = vpack.c.bf16 %v885_v62, %v882_v57  ;;  %v1243_v8 = vpack.c.bf16 %v1225_v5, %v1222_v63 }
 0x288   : > { %928 = vst.msk [vmem:[#allocation2 + $0x78] sm:$0xff] %vm912_vm0, %v911_v1  ;;  %v1242_v36 = vpack.c.bf16 %v1217_v7, %v1214_v2 }
 0x289   : > { %927 = vst.msk [vmem:[#allocation2 + $0x70] sm:$0xff] %vm912_vm0, %v910_v4  ;;  %1259 = vst [vmem:[#allocation4 + $0x78] sm:$0xff] %v1243_v8 }
 0x28a   : > { %1258 = vst [vmem:[#allocation4 + $0x70] sm:$0xff] %v1242_v36 }
 0x28e   : > { %v983_v10 = vpop.f32.mrb[32].mxu1 }
 0x28f   : > { %v985_v11 = vpop.f32.mrb[33].mxu1  ;;  %v984_v14 = vadd.f32 %v983_v10, %v936_v9 }
 0x290   : > { %v987_v13 = vpop.f32.mrb[34].mxu1  ;;  %v986_v17 = vadd.f32 %v985_v11, %v936_v9 }
 0x291   : > { %v988_v15 = vadd.f32 %v987_v13, %v941_v12  ;;  %v989_v16 = vpop.f32.mrb[35].mxu1 }
 0x292   : > { %v990_v18 = vadd.f32 %v989_v16, %v941_v12 }
 0x293   : > { %v992_v19 = vpack.c.bf16 %v988_v15, %v984_v14 }
 0x294   : > { %v993_v20 = vpack.c.bf16 %v990_v18, %v986_v17 }
 0x295   : > { %994 = vst [vmem:[#allocation3] sm:$0xff] %v992_v19 }
 0x296   : > { %995 = vst [vmem:[#allocation3 + $0x8] sm:$0xff] %v993_v20 }
 0x297 PF: > { %s4086_s25 = sld [smem:[#allocation32_spill]]  ;;  %v3113_v22 = vmov 0   ;;  %vm1275_vm1 = vcmask 130048   ;;  %v1629_v31 = vld [vmem:[#allocation4 + $0x40] sm:$0xff]  ;;  %v1630_v33 = vld [vmem:[#allocation4 + $0x48] sm:$0xff]  ;;  %v1631_v35 = vld [vmem:[#allocation4 + $0x50] sm:$0xff] }
 0x298   : > { %1332 = vmatprep.mubr.bf16.mxu0 %v3113_v22  ;;  %v1621_v32 = vld [vmem:[#allocation4] sm:$0xff]  ;;  %2364 = vmatprep.subr.bf16.mxu1 %v1629_v31  ;;  %v1622_v34 = vld [vmem:[#allocation4 + $0x8] sm:$0xff]  ;;  %v1623_v37 = vld [vmem:[#allocation4 + $0x10] sm:$0xff]  ;;  %s1734_s1 = sld [smem:[#allocation5]]  ;;  %s4087_s27 = sld [smem:[#allocation33_spill]] }
 0x299   : > { %2372 = vmatpush3.bf16.msra.mxu1 %v1621_v32  ;;  %v1632_v38 = vld [vmem:[#allocation4 + $0x58] sm:$0xff]  ;;  %v1633_v2 = vld [vmem:[#allocation4 + $0x60] sm:$0xff]  ;;  %v1634_v9 = vld [vmem:[#allocation4 + $0x68] sm:$0xff]  ;;  %s1879_s0 = sshll.u32 %s3611_s21, 4  ;;  %p4090_p5 = scmp.ne.s32.totalorder %s4066_s13, 0  ;;  %s3935_s0 = int_to_ptr.vmem [resolvable:$true] %s1879_s0 }
 0x29a   : > { %2365 = vmatprep.subr.bf16.mxu1 %v1630_v33  ;;  %v1624_v0 = vld [vmem:[#allocation4 + $0x18] sm:$0xff]  ;;  %v1625_v4 = vld [vmem:[#allocation4 + $0x20] sm:$0xff]  ;;  %v1626_v36 = vld [vmem:[#allocation4 + $0x28] sm:$0xff] }
 0x29b   : > { %v1635_v11 = vld [vmem:[#allocation4 + $0x70] sm:$0xff]  ;;  %v1636_v18 = vld [vmem:[#allocation4 + $0x78] sm:$0xff] }
 0x29c   : > { %v1273_v21 = vld [vmem:[#allocation3] sm:$0xff]  ;;  %v1628_v19 = vld [vmem:[#allocation4 + $0x38] sm:$0xff] }
 0x29d   : > { %v1274_v40 = vld [vmem:[#allocation3 + $0x8] sm:$0xff]  ;;  %s2122_s30 = sshll.u32 %s4086_s25, 7  ;;  %2373 = vmatpush3.bf16.msra.mxu1 %v1622_v34  ;;  %v1627_v13 = vld [vmem:[#allocation4 + $0x30] sm:$0xff] }
 0x29e   : > { %1300 = vmatprep.subr.bf16.mxu0 %v1274_v40  ;;  %s1261_s12 = sshra.s32 %s2122_s30, 4  ;;  %2366 = vmatprep.subr.bf16.mxu1 %v1631_v35  ;;  %s2133_s16 = sshll.u32 %s4087_s27, 5 }
 0x29f   : > { %1301 = vmatpush1.bf16.msra.mxu0 %v1273_v21  ;;  %s2123_s28 = sshll.u32 %s1261_s12, 3  ;;  %s1876_s5 = sadd.s32 %s4086_s25, %s2133_s16 }
 0x2a0   : > { %s1264_s17 = scalar_lea.vmem [#allocation2], %s2123_s28  ;;  %2204 = vmatprep.subr.bf16.mxu0 %v1629_v31  ;;  %s2134_s2 = sshll.u32 %s1876_s5, 7 }
 0x2a1   : > { %v1265_v23 = vld [vmem:[%s1264_s17] sm:$0xff]  ;;  %v1266_v24 = vld [vmem:[%s1264_s17 + $0x8] sm:$0xff]  ;;  %v1267_v25 = vld [vmem:[%s1264_s17 + $0x10] sm:$0xff]  ;;  %2374 = vmatpush3.bf16.msra.mxu1 %v1623_v37  ;;  %s4089_s12 = sld [smem:[#allocation41_spill]]  ;;  %s3940_s25 = scalar_lea.sflag [#allocation8], %s459_s20 }
 0x2a2   : > { %2124 = vmatmul.mubr.msk.bf16.vlgmr.msra.gmra.mrb[0].mxu0 %vm1275_vm1, %v1265_v23  ;;  %v1268_v26 = vld [vmem:[%s1264_s17 + $0x18] sm:$0xff]  ;;  %v1269_v27 = vld [vmem:[%s1264_s17 + $0x20] sm:$0xff]  ;;  %v1270_v28 = vld [vmem:[%s1264_s17 + $0x28] sm:$0xff]  ;;  %2367 = vmatprep.subr.bf16.mxu1 %v1632_v38 }
 0x2a3   : > { %1342 = vmatprep.mubr.bf16.mxu0 %v3113_v22  ;;  %v1271_v29 = vld [vmem:[%s1264_s17 + $0x30] sm:$0xff]  ;;  %v1272_v30 = vld [vmem:[%s1264_s17 + $0x38] sm:$0xff]  ;;  %2205 = vmatpush3.bf16.msra.mxu0 %v1621_v32  ;;  %s2954_s17 = scalar_lea.vmem %s3935_s0, 2048 }
 0x2a4   : > { %2206 = vmatprep.subr.bf16.mxu0 %v1630_v33  ;;  %p2955_p10 = scmp.ne.s32.totalorder %s3935_s0, %s2954_s17 }
 0x2a5   : > { %2375 = vmatpush3.bf16.msra.mxu1 %v1624_v0 }
 0x2a6   : > { %2368 = vmatprep.subr.bf16.mxu1 %v1633_v2  ;;  %p2956_p4 = pnand %p2955_p10, %p4090_p5 }
 0x2a7   : > { %2207 = vmatpush3.bf16.msra.mxu0 %v1622_v34  ;;  %s3933_s28 = scalar_lea.hbm %s4089_s12, %s2134_s2 }
 0x2a8   : > { %2208 = vmatprep.subr.bf16.mxu0 %v1631_v35  ;;  %p2957_p11 = pneg %p2956_p4 }
 0x2a9   : > { %2376 = vmatpush3.bf16.msra.mxu1 %v1625_v4 }
 0x2aa   : > { %2125 = vmatmul.mubr.msk.bf16.gmra.mrb[4].mxu0 %vm1275_vm1, %v1266_v24  ;;  %2369 = vmatprep.subr.bf16.mxu1 %v1634_v9 }
 0x2ab   : > { %1352 = vmatprep.mubr.bf16.mxu0 %v3113_v22  ;;  %2209 = vmatpush3.bf16.msra.mxu0 %v1623_v37 }
 0x2ac   : > { %2210 = vmatprep.subr.bf16.mxu0 %v1632_v38 }
 0x2ad   : > { %2377 = vmatpush3.bf16.msra.mxu1 %v1626_v36 }
 0x2ae   : > { %2370 = vmatprep.subr.bf16.mxu1 %v1635_v11 }
 0x2af   : > { %2211 = vmatpush3.bf16.msra.mxu0 %v1624_v0 }
 0x2b0   : > { %2212 = vmatprep.subr.bf16.mxu0 %v1633_v2 }
 0x2b1   : > { %2378 = vmatpush3.bf16.msra.mxu1 %v1627_v13 }
 0x2b2   : > { %2126 = vmatmul.mubr.msk.bf16.gmra.mrb[8].mxu0 %vm1275_vm1, %v1267_v25  ;;  %2371 = vmatprep.subr.bf16.mxu1 %v1636_v18 }
 0x2b3   : > { %1362 = vmatprep.mubr.bf16.mxu0 %v3113_v22  ;;  %2213 = vmatpush3.bf16.msra.mxu0 %v1625_v4 }
 0x2b4   : > { %2214 = vmatprep.subr.bf16.mxu0 %v1634_v9 }
 0x2b5   : > { %2379 = vmatpush3.bf16.msra.mxu1 %v1628_v19 }
 0x2b7   : > { %2215 = vmatpush3.bf16.msra.mxu0 %v1626_v36 }
 0x2b8   : > { %2216 = vmatprep.subr.bf16.mxu0 %v1635_v11 }
 0x2ba   : > { %2127 = vmatmul.mubr.msk.bf16.gmra.mrb[12].mxu0 %vm1275_vm1, %v1268_v26 }
 0x2bb   : > { %1372 = vmatprep.mubr.bf16.mxu0 %v3113_v22  ;;  %2217 = vmatpush3.bf16.msra.mxu0 %v1627_v13 }
 0x2bc   : > { %2218 = vmatprep.subr.bf16.mxu0 %v1636_v18 }
 0x2bf   : > { %2219 = vmatpush3.bf16.msra.mxu0 %v1628_v19 }
 0x2c2   : > { %2128 = vmatmul.mubr.msk.bf16.gmra.mrb[16].mxu0 %vm1275_vm1, %v1269_v27 }
 0x2c3   : > { %1382 = vmatprep.mubr.bf16.mxu0 %v3113_v22 }
 0x2ca   : > { %2129 = vmatmul.mubr.msk.bf16.gmra.mrb[20].mxu0 %vm1275_vm1, %v1270_v28 }
 0x2cb   : > { %1392 = vmatprep.mubr.bf16.mxu0 %v3113_v22 }
 0x2d2   : > { %2130 = vmatmul.mubr.msk.bf16.gmra.mrb[24].mxu0 %vm1275_vm1, %v1271_v29 }
 0x2d3   : > { %1402 = vmatprep.mubr.bf16.mxu0 %v3113_v22 }
 0x2da   : > { %2131 = vmatmul.mubr.msk.bf16.gmra.mrb[28].mxu0 %vm1275_vm1, %v1272_v30 }
 0x375   : > { %v3723_v39 = vpop.f32.mrb[0].mxu0 }
 0x376   : > { %v3725_v41 = vpop.f32.mrb[1].mxu0 }
 0x377   : > { %v3727_v42 = vpop.f32.mrb[2].mxu0  ;;  %v1413_v43 = vmax.f32 %v3723_v39, %v3725_v41 }
 0x378   : > { %v3731_v44 = vpop.f32.mrb[3].mxu0 }
 0x379   : > { %v1416_v45 = vmax.f32 %v3727_v42, %v3731_v44 }
 0x37d   : > { %v3735_v46 = vpop.f32.mrb[4].mxu0 }
 0x37e   : > { %v3737_v47 = vpop.f32.mrb[5].mxu0 }
 0x37f   : > { %v3739_v48 = vpop.f32.mrb[6].mxu0  ;;  %v1419_v49 = vmax.f32 %v3735_v46, %v3737_v47 }
 0x380   : > { %v3743_v50 = vpop.f32.mrb[7].mxu0 }
 0x381   : > { %1420 = vmax.xlane.f32.xlu0 %v1419_v49  ;;  %v1422_v51 = vmax.f32 %v3739_v48, %v3743_v50 }
 0x385   : > { %1423 = vmax.xlane.f32.xlu0 %v1422_v51  ;;  %v3747_v52 = vpop.f32.mrb[8].mxu0 }
 0x386   : > { %v3749_v53 = vpop.f32.mrb[9].mxu0 }
 0x387   : > { %v3751_v54 = vpop.f32.mrb[10].mxu0  ;;  %v1425_v55 = vmax.f32 %v3747_v52, %v3749_v53 }
 0x388   : > { %v3755_v56 = vpop.f32.mrb[11].mxu0 }
 0x389   : > { %1426 = vmax.xlane.f32.xlu1 %v1425_v55  ;;  %v1428_v57 = vmax.f32 %v3751_v54, %v3755_v56 }
 0x38d   : > { %1429 = vmax.xlane.f32.xlu1 %v1428_v57  ;;  %v3759_v58 = vpop.f32.mrb[12].mxu0 }
 0x38e   : > { %v3761_v59 = vpop.f32.mrb[13].mxu0 }
 0x38f   : > { %v3763_v60 = vpop.f32.mrb[14].mxu0  ;;  %v1431_v61 = vmax.f32 %v3759_v58, %v3761_v59 }
 0x390   : > { %v3767_v62 = vpop.f32.mrb[15].mxu0 }
 0x391   : > { %1432 = vmax.xlane.f32.xlu0 %v1431_v61  ;;  %v1434_v63 = vmax.f32 %v3763_v60, %v3767_v62 }
 0x393   : > { %1435 = vmax.xlane.f32.xlu1 %v1434_v63 }
 0x395   : > { %1414 = vmax.xlane.f32.xlu0 %v1413_v43  ;;  %v3771_v1 = vpop.f32.mrb[16].mxu0 }
 0x396   : > { %v3773_v3 = vpop.f32.mrb[17].mxu0 }
 0x397   : > { %1417 = vmax.xlane.f32.xlu1 %v1416_v45  ;;  %v3775_v5 = vpop.f32.mrb[18].mxu0  ;;  %v1437_v6 = vmax.f32 %v3771_v1, %v3773_v3 }
 0x398   : > { %v3779_v7 = vpop.f32.mrb[19].mxu0 }
 0x399   : > { %1438 = vmax.xlane.f32.xlu0 %v1437_v6  ;;  %v1440_v8 = vmax.f32 %v3775_v5, %v3779_v7 }
 0x39b   : > { %1441 = vmax.xlane.f32.xlu1 %v1440_v8 }
 0x39d   : > { %v3783_v10 = vpop.f32.mrb[20].mxu0 }
 0x39e   : > { %v3785_v12 = vpop.f32.mrb[21].mxu0 }
 0x39f   : > { %v3787_v14 = vpop.f32.mrb[22].mxu0  ;;  %v1443_v15 = vmax.f32 %v3783_v10, %v3785_v12 }
 0x3a0   : > { %v3791_v16 = vpop.f32.mrb[23].mxu0 }
 0x3a1   : > { %1444 = vmax.xlane.f32.xlu0 %v1443_v15  ;;  %v1446_v17 = vmax.f32 %v3787_v14, %v3791_v16 }
 0x3a3   : > { %1447 = vmax.xlane.f32.xlu1 %v1446_v17 }
 0x3a5   : > { %v3795_v20 = vpop.f32.mrb[24].mxu0 }
 0x3a6   : > { %v3797_v40 = vpop.f32.mrb[25].mxu0 }
 0x3a7   : > { %v3799_v21 = vpop.f32.mrb[26].mxu0  ;;  %v1449_v22 = vmax.f32 %v3795_v20, %v3797_v40 }
 0x3a8   : > { %v3803_v23 = vpop.f32.mrb[27].mxu0 }
 0x3a9   : > { %1450 = vmax.xlane.f32.xlu0 %v1449_v22  ;;  %v1452_v24 = vmax.f32 %v3799_v21, %v3803_v23 }
 0x3ab   : > { %1453 = vmax.xlane.f32.xlu1 %v1452_v24 }
 0x3ad   : > { %v3807_v25 = vpop.f32.mrb[28].mxu0 }
 0x3ae   : > { %v3809_v26 = vpop.f32.mrb[29].mxu0 }
 0x3af   : > { %v3811_v27 = vpop.f32.mrb[30].mxu0  ;;  %v1455_v28 = vmax.f32 %v3807_v25, %v3809_v26 }
 0x3b0   : > { %v3815_v29 = vpop.f32.mrb[31].mxu0 }
 0x3b1   : > { %1456 = vmax.xlane.f32.xlu0 %v1455_v28  ;;  %v1458_v30 = vmax.f32 %v3811_v27, %v3815_v29 }
 0x3b3   : > { %1459 = vmax.xlane.f32.xlu1 %v1458_v30 }
 0x40e   : > { %v1421_v31 = vpop.xlane.xlu0 %1420 }
 0x40f   : > { %v1465_v32 = vsub.f32 %v3735_v46, %v1421_v31  ;;  %v1466_v33 = vsub.f32 %v3737_v47, %v1421_v31 }
 0x411   : > { %v1501_v34 = vmul.f32 1.442695, %v1465_v32  ;;  %v1503_v35 = vmul.f32 1.442695, %v1466_v33 }
 0x412   : > { %v1424_v37 = vpop.xlane.xlu0 %1423 }
 0x413   : > { %2602 = vpow2.f32 %v1501_v34  ;;  %v1467_v38 = vsub.f32 %v3739_v48, %v1424_v37  ;;  %v1468_v43 = vsub.f32 %v3743_v50, %v1424_v37 }
 0x414   : > { %2604 = vpow2.f32 %v1503_v35 }
 0x415   : > { %v1505_v45 = vmul.f32 1.442695, %v1467_v38  ;;  %v1507_v49 = vmul.f32 1.442695, %v1468_v43 }
 0x416   : > { %v1427_v51 = vpop.xlane.xlu1 %1426 }
 0x417   : > { %2606 = vpow2.f32 %v1505_v45  ;;  %v1469_v55 = vsub.f32 %v3747_v52, %v1427_v51  ;;  %v1470_v57 = vsub.f32 %v3749_v53, %v1427_v51 }
 0x418   : > { %2608 = vpow2.f32 %v1507_v49 }
 0x419   : > { %v1509_v46 = vmul.f32 1.442695, %v1469_v55  ;;  %v1511_v47 = vmul.f32 1.442695, %v1470_v57 }
 0x41a   : > { %v1430_v61 = vpop.xlane.xlu1 %1429 }
 0x41b   : > { %2610 = vpow2.f32 %v1509_v46  ;;  %v1471_v63 = vsub.f32 %v3751_v54, %v1430_v61  ;;  %v1472_v48 = vsub.f32 %v3755_v56, %v1430_v61 }
 0x41c   : > { %2612 = vpow2.f32 %v1511_v47 }
 0x41d   : > { %v2603_v50 = vpop.eup %2602  ;;  %v1513_v0 = vmul.f32 1.442695, %v1471_v63  ;;  %v1515_v2 = vmul.f32 1.442695, %v1472_v48 }
 0x41e   : > { %v2605_v4 = vpop.eup %2604  ;;  %v1433_v6 = vpop.xlane.xlu0 %1432 }
 0x41f   : > { %2614 = vpow2.f32 %v1513_v0  ;;  %v1473_v52 = vsub.f32 %v3759_v58, %v1433_v6  ;;  %v1474_v53 = vsub.f32 %v3761_v59, %v1433_v6  ;;  %v3829_v8 = vadd.f32 %v2605_v4, %v2603_v50 }
 0x420   : > { %2616 = vpow2.f32 %v1515_v2  ;;  %v1436_v9 = vpop.xlane.xlu1 %1435 }
 0x421   : > { %v2607_v36 = vpop.eup %2606  ;;  %v1517_v11 = vmul.f32 1.442695, %v1473_v52  ;;  %v1519_v54 = vmul.f32 1.442695, %v1474_v53  ;;  %v1475_v56 = vsub.f32 %v3763_v60, %v1436_v9  ;;  %v1476_v13 = vsub.f32 %v3767_v62, %v1436_v9 }
 0x422   : > { %v2609_v15 = vpop.eup %2608  ;;  %v1415_v17 = vpop.xlane.xlu0 %1414  ;;  %v1607_v18 = vpack.c.bf16 %v2607_v36, %v2603_v50 }
 0x423   : > { %2618 = vpow2.f32 %v1517_v11  ;;  %v1521_v19 = vmul.f32 1.442695, %v1475_v56  ;;  %v1523_v22 = vmul.f32 1.442695, %v1476_v13  ;;  %v1461_v58 = vsub.f32 %v3723_v39, %v1415_v17 }
 0x424   : > { %2620 = vpow2.f32 %v1519_v54  ;;  %v1462_v59 = vsub.f32 %v3725_v41, %v1415_v17  ;;  %v1608_v24 = vpack.c.bf16 %v2609_v15, %v2605_v4  ;;  %v1418_v28 = vpop.xlane.xlu1 %1417  ;;  %v3835_v30 = vadd.f32 %v2609_v15, %v2607_v36 }
 0x425   : > { %v2611_v31 = vpop.eup %2610  ;;  %2622 = vpow2.f32 %v1521_v19  ;;  %v1493_v60 = vmul.f32 1.442695, %v1461_v58  ;;  %v1463_v62 = vsub.f32 %v3727_v42, %v1418_v28  ;;  %v1464_v32 = vsub.f32 %v3731_v44, %v1418_v28 }
 0x426   : > { %v2613_v33 = vpop.eup %2612  ;;  %2624 = vpow2.f32 %v1523_v22  ;;  %v1495_v34 = vmul.f32 1.442695, %v1462_v59  ;;  %1677 = vmatprep.mubr.bf16.mxu1 %v1608_v24  ;;  %v1439_v35 = vpop.xlane.xlu0 %1438 }
 0x427   : > { %2626 = vpow2.f32 %v1493_v60  ;;  %v1497_v39 = vmul.f32 1.442695, %v1463_v62  ;;  %v1499_v37 = vmul.f32 1.442695, %v1464_v32  ;;  %1678 = vmatmul.mubr.bf16.vlgmr.msra.gmra.mrb[0].mxu1 %v1607_v18  ;;  %v1477_v41 = vsub.f32 %v3771_v1, %v1439_v35 }
 0x428   : > { %2628 = vpow2.f32 %v1495_v34  ;;  %v1478_v38 = vsub.f32 %v3773_v3, %v1439_v35  ;;  %v1442_v43 = vpop.xlane.xlu1 %1441  ;;  %v3841_v45 = vadd.f32 %v2613_v33, %v2611_v31 }
 0x429   : > { %v2615_v42 = vpop.eup %2614  ;;  %2630 = vpow2.f32 %v1497_v39  ;;  %v1525_v44 = vmul.f32 1.442695, %v1477_v41  ;;  %v1479_v49 = vsub.f32 %v3775_v5, %v1442_v43  ;;  %v1480_v51 = vsub.f32 %v3779_v7, %v1442_v43 }
 0x42a   : > { %v2617_v55 = vpop.eup %2616  ;;  %2632 = vpow2.f32 %v1499_v37  ;;  %v1527_v57 = vmul.f32 1.442695, %v1478_v38  ;;  %v1609_v46 = vpack.c.bf16 %v2615_v42, %v2611_v31 }
 0x42b   : > { %2634 = vpow2.f32 %v1525_v44  ;;  %v1529_v47 = vmul.f32 1.442695, %v1479_v49  ;;  %v1531_v1 = vmul.f32 1.442695, %v1480_v51  ;;  %v1610_v61 = vpack.c.bf16 %v2617_v55, %v2613_v33 }
 0x42c   : > { %2636 = vpow2.f32 %v1527_v57  ;;  %v3845_v3 = vadd.f32 %v2617_v55, %v2615_v42 }
 0x42d   : > { %v2619_v63 = vpop.eup %2618  ;;  %2638 = vpow2.f32 %v1529_v47  ;;  %1685 = vmatprep.mubr.bf16.mxu1 %v1610_v61 }
 0x42e   : > { %v2621_v48 = vpop.eup %2620  ;;  %2640 = vpow2.f32 %v1531_v1  ;;  %v1445_v50 = vpop.xlane.xlu0 %1444 }
 0x42f   : > { %v2623_v5 = vpop.eup %2622  ;;  %1686 = vmatmul.mubr.bf16.gmra.mrb[4].mxu1 %v1609_v46  ;;  %v1481_v7 = vsub.f32 %v3783_v10, %v1445_v50  ;;  %v1482_v0 = vsub.f32 %v3785_v12, %v1445_v50  ;;  %v3849_v2 = vadd.f32 %v2621_v48, %v2619_v63 }
 0x430   : > { %v2625_v4 = vpop.eup %2624  ;;  %v1448_v6 = vpop.xlane.xlu1 %1447  ;;  %v1611_v52 = vpack.c.bf16 %v2623_v5, %v2619_v63 }
 0x431   : > { %v2627_v53 = vpop.eup %2626  ;;  %v1533_v9 = vmul.f32 1.442695, %v1481_v7  ;;  %v1535_v36 = vmul.f32 1.442695, %v1482_v0  ;;  %v1483_v11 = vsub.f32 %v3787_v14, %v1448_v6  ;;  %v1484_v54 = vsub.f32 %v3791_v16, %v1448_v6 }
 0x432   : > { %v2629_v56 = vpop.eup %2628  ;;  %v1612_v13 = vpack.c.bf16 %v2625_v4, %v2621_v48  ;;  %v3853_v15 = vadd.f32 %v2625_v4, %v2623_v5 }
 0x433   : > { %v2631_v17 = vpop.eup %2630  ;;  %2642 = vpow2.f32 %v1533_v9  ;;  %v1537_v10 = vmul.f32 1.442695, %v1483_v11  ;;  %v1539_v12 = vmul.f32 1.442695, %v1484_v54  ;;  %v1557_v18 = vadd.f32 %v2629_v56, %v2627_v53 }
 0x434   : > { %v2633_v19 = vpop.eup %2632  ;;  %2644 = vpow2.f32 %v1535_v36  ;;  %1693 = vmatprep.mubr.bf16.mxu1 %v1612_v13  ;;  %v1605_v22 = vpack.c.bf16 %v2631_v17, %v2627_v53 }
 0x435   : > { %v2635_v58 = vpop.eup %2634  ;;  %2646 = vpow2.f32 %v1537_v10  ;;  %1558 = vadd.xlane.f32.xlu0 %v1557_v18  ;;  %v1606_v59 = vpack.c.bf16 %v2633_v19, %v2629_v56  ;;  %v1560_v14 = vadd.f32 %v2633_v19, %v2631_v17 }
 0x436   : > { %v2637_v24 = vpop.eup %2636  ;;  %2648 = vpow2.f32 %v1539_v12  ;;  %v1451_v16 = vpop.xlane.xlu0 %1450 }
 0x437   : > { %v2639_v28 = vpop.eup %2638  ;;  %1694 = vmatmul.mubr.bf16.gmra.mrb[8].mxu1 %v1611_v52  ;;  %1669 = vmatprep.mubr.bf16.mxu0 %v1606_v59  ;;  %v1485_v31 = vsub.f32 %v3795_v20, %v1451_v16  ;;  %v1486_v60 = vsub.f32 %v3797_v40, %v1451_v16  ;;  %v1581_v62 = vadd.f32 %v2637_v24, %v2635_v58 }
 0x438   : > { %v2641_v32 = vpop.eup %2640  ;;  %1561 = vadd.xlane.f32.xlu1 %v1560_v14  ;;  %1670 = vmatmul.mubr.bf16.vlgmr.msra.gmra.mrb[32].mxu0 %v1605_v22  ;;  %v1454_v33 = vpop.xlane.xlu1 %1453  ;;  %v1613_v34 = vpack.c.bf16 %v2639_v28, %v2635_v58 }
 0x439   : > { %v1541_v35 = vmul.f32 1.442695, %v1485_v31  ;;  %v1543_v39 = vmul.f32 1.442695, %v1486_v60  ;;  %v1487_v37 = vsub.f32 %v3799_v21, %v1454_v33  ;;  %v1488_v41 = vsub.f32 %v3803_v23, %v1454_v33  ;;  %1564 = vadd.xlane.f32.xlu0 %v3829_v8 }
 0x43a   : > { %v1614_v38 = vpack.c.bf16 %v2641_v32, %v2637_v24  ;;  %v1584_v43 = vadd.f32 %v2641_v32, %v2639_v28 }
 0x43b   : > { %2650 = vpow2.f32 %v1541_v35  ;;  %v1545_v20 = vmul.f32 1.442695, %v1487_v37  ;;  %v1547_v42 = vmul.f32 1.442695, %v1488_v41 }
 0x43c   : > { %2652 = vpow2.f32 %v1543_v39  ;;  %1701 = vmatprep.mubr.bf16.mxu1 %v1614_v38  ;;  %1567 = vadd.xlane.f32.xlu1 %v3835_v30 }
 0x43d   : > { %v2643_v40 = vpop.eup %2642  ;;  %2654 = vpow2.f32 %v1545_v20  ;;  %1570 = vadd.xlane.f32.xlu0 %v3841_v45 }
 0x43e   : > { %v2645_v44 = vpop.eup %2644  ;;  %2656 = vpow2.f32 %v1547_v42  ;;  %v1457_v21 = vpop.xlane.xlu0 %1456 }
 0x43f   : > { %v2647_v49 = vpop.eup %2646  ;;  %1702 = vmatmul.mubr.bf16.gmra.mrb[12].mxu1 %v1613_v34  ;;  %v1489_v23 = vsub.f32 %v3807_v25, %v1457_v21  ;;  %v1490_v8 = vsub.f32 %v3809_v26, %v1457_v21  ;;  %v1587_v51 = vadd.f32 %v2645_v44, %v2643_v40 }
 0x440   : > { %v2649_v55 = vpop.eup %2648  ;;  %1573 = vadd.xlane.f32.xlu1 %v3845_v3  ;;  %v1460_v57 = vpop.xlane.xlu1 %1459  ;;  %v1615_v46 = vpack.c.bf16 %v2647_v49, %v2643_v40 }
 0x441   : > { %v1549_v30 = vmul.f32 1.442695, %v1489_v23  ;;  %v1551_v47 = vmul.f32 1.442695, %v1490_v8  ;;  %1576 = vadd.xlane.f32.xlu0 %v3849_v2  ;;  %v1491_v45 = vsub.f32 %v3811_v27, %v1460_v57  ;;  %v1492_v1 = vsub.f32 %v3815_v29, %v1460_v57 }
 0x442   : > { %v1616_v61 = vpack.c.bf16 %v2649_v55, %v2645_v44  ;;  %v1590_v63 = vadd.f32 %v2649_v55, %v2647_v49 }
 0x443   : > { %2658 = vpow2.f32 %v1549_v30  ;;  %v1553_v25 = vmul.f32 1.442695, %v1491_v45  ;;  %v1555_v48 = vmul.f32 1.442695, %v1492_v1 }
 0x444   : > { %2660 = vpow2.f32 %v1551_v47  ;;  %1709 = vmatprep.mubr.bf16.mxu1 %v1616_v61  ;;  %1579 = vadd.xlane.f32.xlu1 %v3853_v15 }
 0x445   : > { %v2651_v26 = vpop.eup %2650  ;;  %2662 = vpow2.f32 %v1553_v25  ;;  %1582 = vadd.xlane.f32.xlu0 %v1581_v62  ;;  %v3871_v62 = vstv %s1734_s1 }
 0x446   : > { %v2653_v3 = vpop.eup %2652  ;;  %2664 = vpow2.f32 %v1555_v48 }
 0x447   : > { %v2655_v50 = vpop.eup %2654  ;;  %1710 = vmatmul.mubr.bf16.gmra.mrb[16].mxu1 %v1615_v46  ;;  %v1593_v5 = vadd.f32 %v2653_v3, %v2651_v26 }
 0x448   : > { %v2657_v27 = vpop.eup %2656  ;;  %1585 = vadd.xlane.f32.xlu1 %v1584_v43  ;;  %v1617_v29 = vpack.c.bf16 %v2655_v50, %v2651_v26 }
 0x449   : > { %1588 = vadd.xlane.f32.xlu0 %v1587_v51  ;;  %v1618_v7 = vpack.c.bf16 %v2657_v27, %v2653_v3  ;;  %v1596_v0 = vadd.f32 %v2657_v27, %v2655_v50 }
 0x44b   : > { %1717 = vmatprep.mubr.bf16.mxu1 %v1618_v7 }
 0x44c   : > { %1591 = vadd.xlane.f32.xlu1 %v1590_v63 }
 0x44d   : > { %v2659_v2 = vpop.eup %2658  ;;  %1594 = vadd.xlane.f32.xlu0 %v1593_v5 }
 0x44e   : > { %v2661_v4 = vpop.eup %2660 }
 0x44f   : > { %v2663_v6 = vpop.eup %2662  ;;  %1718 = vmatmul.mubr.bf16.gmra.mrb[20].mxu1 %v1617_v29  ;;  %v1599_v52 = vadd.f32 %v2661_v4, %v2659_v2 }
 0x450   : > { %v2665_v53 = vpop.eup %2664  ;;  %1597 = vadd.xlane.f32.xlu1 %v1596_v0  ;;  %v1619_v9 = vpack.c.bf16 %v2663_v6, %v2659_v2 }
 0x451   : > { %1600 = vadd.xlane.f32.xlu0 %v1599_v52  ;;  %v1620_v36 = vpack.c.bf16 %v2665_v53, %v2661_v4  ;;  %v1602_v11 = vadd.f32 %v2665_v53, %v2663_v6 }
 0x453   : > { %1725 = vmatprep.mubr.bf16.mxu1 %v1620_v36 }
 0x454   : > { %1603 = vadd.xlane.f32.xlu1 %v1602_v11 }
 0x457   : > { %1726 = vmatmul.mubr.bf16.gmra.mrb[24].mxu1 %v1619_v9 }
 0x4c2   : > { %v1559_v17 = vpop.xlane.xlu0 %1558 }
 0x4c3   : > { %2666 = vrcp.f32 %v1559_v17 }
 0x4c5   : > { %v1562_v18 = vpop.xlane.xlu1 %1561 }
 0x4c6   : > { %2668 = vrcp.f32 %v1562_v18  ;;  %v1565_v58 = vpop.xlane.xlu0 %1564 }
 0x4c7   : > { %2670 = vrcp.f32 %v1565_v58 }
 0x4c9   : > { %v1568_v28 = vpop.xlane.xlu1 %1567 }
 0x4ca   : > { %v1571_v60 = vpop.xlane.xlu0 %1570  ;;  %2672 = vrcp.f32 %v1568_v28 }
 0x4cb   : > { %2674 = vrcp.f32 %v1571_v60 }
 0x4cd   : > { %v2667_v31 = vpop.eup %2666  ;;  %v1574_v23 = vpop.xlane.xlu1 %1573 }
 0x4ce   : > { %v1752_v20 = vmul.f32 %v2667_v31, %v3871_v62  ;;  %2676 = vrcp.f32 %v1574_v23  ;;  %v1577_v45 = vpop.xlane.xlu0 %1576 }
 0x4cf   : > { %2678 = vrcp.f32 %v1577_v45 }
 0x4d0   : > { %v2669_v42 = vpop.eup %2668 }
 0x4d1   : > { %v1753_v8 = vmul.f32 %v2669_v42, %v3871_v62  ;;  %v2671_v51 = vpop.eup %2670  ;;  %v1580_v26 = vpop.xlane.xlu1 %1579 }
 0x4d2   : > { %v1754_v1 = vmul.f32 %v2671_v51, %v3871_v62  ;;  %2680 = vrcp.f32 %v1580_v26  ;;  %v1583_v2 = vpop.xlane.xlu0 %1582 }
 0x4d3   : > { %2682 = vrcp.f32 %v1583_v2  ;;  %v1818_v2 = vld [vmem:[%s3589_s11 + $0x10] sm:$0xff] }
 0x4d4   : > { %v2673_v63 = vpop.eup %2672 }
 0x4d5   : > { %v1755_v3 = vmul.f32 %v2673_v63, %v3871_v62  ;;  %v2675_v50 = vpop.eup %2674  ;;  %v1586_v36 = vpop.xlane.xlu1 %1585 }
 0x4d6   : > { %v1756_v4 = vmul.f32 %v2675_v50, %v3871_v62  ;;  %2684 = vrcp.f32 %v1586_v36  ;;  %v1816_v50 = vld [vmem:[%s3589_s11] sm:$0xff] }
 0x4d8   : > { %v2677_v52 = vpop.eup %2676 }
 0x4d9   : > { %v1757_v11 = vmul.f32 %v2677_v52, %v3871_v62 }
 0x4fa   : > { %v2226_v54 = vpop.f32.mrb[0].mxu1 }
 0x4fb   : > { %v2227_v56 = vpop.f32.mrb[1].mxu1 }
 0x4fc   : > { %v2228_v13 = vadd.f32 %v2227_v56, %v2226_v54  ;;  %v2229_v15 = vpop.f32.mrb[2].mxu1  ;;  %v2679_v54 = vpop.eup %2678 }
 0x4fd   : > { %v2230_v10 = vpop.f32.mrb[3].mxu1  ;;  %v1758_v18 = vmul.f32 %v2679_v54, %v3871_v62  ;;  %v1821_v54 = vld [vmem:[%s3589_s11 + $0x28] sm:$0xff] }
 0x4fe   : > { %v2231_v12 = vadd.f32 %v2230_v10, %v2229_v15  ;;  %v1770_v48 = vmul.f32 %v2228_v13, %v1754_v1 }
 0x500   : > { %v1771_v27 = vmul.f32 %v2231_v12, %v1755_v3  ;;  %v1589_v12 = vpop.xlane.xlu0 %1588 }
 0x501   : > { %2686 = vrcp.f32 %v1589_v12  ;;  %v1823_v12 = vld [vmem:[%s3589_s11 + $0x38] sm:$0xff] }
 0x502   : > { %v2232_v19 = vpop.f32.mrb[4].mxu1 }
 0x503   : > { %v2233_v22 = vpop.f32.mrb[5].mxu1 }
 0x504   : > { %v2234_v59 = vadd.f32 %v2233_v22, %v2232_v19  ;;  %v2235_v14 = vpop.f32.mrb[6].mxu1  ;;  %v2681_v22 = vpop.eup %2680 }
 0x505   : > { %v2236_v24 = vpop.f32.mrb[7].mxu1  ;;  %v2683_v28 = vpop.eup %2682 }
 0x506   : > { %v3869_v16 = vadd.f32 %v2236_v24, %v2235_v14  ;;  %v1772_v9 = vmul.f32 %v2234_v59, %v1756_v4  ;;  %v1592_v14 = vpop.xlane.xlu1 %1591  ;;  %v1759_v24 = vmul.f32 %v2681_v22, %v3871_v62  ;;  %v1824_v22 = vld [vmem:[%s3589_s11 + $0x40] sm:$0xff] }
 0x507   : > { %2688 = vrcp.f32 %v1592_v14  ;;  %v1825_v14 = vld [vmem:[%s3589_s11 + $0x48] sm:$0xff] }
 0x508   : > { %v1773_v13 = vmul.f32 %v3869_v16, %v1757_v11 }
 0x50a   : > { %v2238_v32 = vpop.f32.mrb[8].mxu1 }
 0x50b   : > { %v2239_v33 = vpop.f32.mrb[9].mxu1  ;;  %v2220_v34 = vpop.f32.mrb[32].mxu0 }
 0x50c   : > { %v3873_v35 = vadd.f32 %v2239_v33, %v2238_v32  ;;  %v2241_v39 = vpop.f32.mrb[10].mxu1  ;;  %v2221_v37 = vpop.f32.mrb[33].mxu0 }
 0x50d   : > { %v2222_v41 = vadd.f32 %v2221_v37, %v2220_v34  ;;  %v2242_v38 = vpop.f32.mrb[11].mxu1  ;;  %v2223_v43 = vpop.f32.mrb[34].mxu0 }
 0x50e   : > { %v3876_v40 = vadd.f32 %v2242_v38, %v2241_v39  ;;  %v2224_v44 = vpop.f32.mrb[35].mxu0  ;;  %v1774_v59 = vmul.f32 %v3873_v35, %v1758_v18  ;;  %v1595_v34 = vpop.xlane.xlu0 %1594  ;;  %v1760_v39 = vmul.f32 %v2683_v28, %v3871_v62 }
 0x50f   : > { %v2225_v21 = vadd.f32 %v2224_v44, %v2223_v43  ;;  %v1768_v49 = vmul.f32 %v2222_v41, %v1752_v20  ;;  %v2685_v41 = vpop.eup %2684  ;;  %2690 = vrcp.f32 %v1595_v34  ;;  %v1598_v43 = vpop.xlane.xlu1 %1597 }
 0x510   : > { %v1775_v31 = vmul.f32 %v3876_v40, %v1759_v24  ;;  %v1761_v20 = vmul.f32 %v2685_v41, %v3871_v62  ;;  %v2687_v42 = vpop.eup %2686  ;;  %2692 = vrcp.f32 %v1598_v43 }
 0x511   : > { %1784 = vxpose.xlu0.b32.start [1/16] %v1768_v49, 128  ;;  %v1769_v57 = vmul.f32 %v2225_v21, %v1753_v8  ;;  %v1762_v21 = vmul.f32 %v2687_v42, %v3871_v62  ;;  %v2689_v49 = vpop.eup %2688 }
 0x512   : > { %v2244_v55 = vpop.f32.mrb[12].mxu1  ;;  %v1601_v40 = vpop.xlane.xlu0 %1600  ;;  %v1763_v51 = vmul.f32 %v2689_v49, %v3871_v62 }
 0x513   : > { %v2245_v46 = vpop.f32.mrb[13].mxu1  ;;  %2694 = vrcp.f32 %v1601_v40  ;;  %v1604_v8 = vpop.xlane.xlu1 %1603  ;;  %v1831_v40 = vld [vmem:[%s3589_s11 + $0x78] sm:$0xff] }
 0x514   : > { %v2246_v30 = vadd.f32 %v2245_v46, %v2244_v55  ;;  %v2247_v47 = vpop.f32.mrb[14].mxu1  ;;  %2696 = vrcp.f32 %v1604_v8 }
 0x515   : > { %v2248_v61 = vpop.f32.mrb[15].mxu1  ;;  %1785 = vxpose.xlu0.b32.cont [2/16] %v1769_v57, 128 }
 0x516   : > { %v2249_v25 = vadd.f32 %v2248_v61, %v2247_v47  ;;  %v1776_v38 = vmul.f32 %v2246_v30, %v1760_v39  ;;  %v1828_v39 = vld [vmem:[%s3589_s11 + $0x60] sm:$0xff] }
 0x518   : > { %v1777_v44 = vmul.f32 %v2249_v25, %v1761_v20  ;;  %v1830_v20 = vld [vmem:[%s3589_s11 + $0x70] sm:$0xff] }
 0x519   : > { %1786 = vxpose.xlu0.b32.cont [3/16] %v1770_v48, 128  ;;  %v2691_v55 = vpop.eup %2690 }
 0x51a   : > { %v2250_v5 = vpop.f32.mrb[16].mxu1  ;;  %v1764_v46 = vmul.f32 %v2691_v55, %v3871_v62  ;;  %v2693_v30 = vpop.eup %2692 }
 0x51b   : > { %v2251_v29 = vpop.f32.mrb[17].mxu1  ;;  %v1765_v45 = vmul.f32 %v2693_v30, %v3871_v62 }
 0x51c   : > { %v2252_v7 = vadd.f32 %v2251_v29, %v2250_v5  ;;  %v2253_v0 = vpop.f32.mrb[18].mxu1  ;;  %v1817_v29 = vld [vmem:[%s3589_s11 + $0x8] sm:$0xff] }
 0x51d   : > { %v2254_v6 = vpop.f32.mrb[19].mxu1  ;;  %1787 = vxpose.xlu0.b32.cont [4/16] %v1771_v27, 128  ;;  %v2695_v1 = vpop.eup %2694 }
 0x51e   : > { %v2255_v53 = vadd.f32 %v2254_v6, %v2253_v0  ;;  %v1778_v23 = vmul.f32 %v2252_v7, %v1762_v21  ;;  %v1766_v63 = vmul.f32 %v2695_v1, %v3871_v62  ;;  %v2697_v25 = vpop.eup %2696  ;;  %v1819_v6 = vld [vmem:[%s3589_s11 + $0x18] sm:$0xff] }
 0x51f   : > { %v1767_v26 = vmul.f32 %v2697_v25, %v3871_v62 }
 0x520   : > { %v1779_v57 = vmul.f32 %v2255_v53, %v1763_v51 }
 0x521   : > { %1788 = vxpose.xlu0.b32.cont [5/16] %v1772_v9, 128  ;;  %v1820_v9 = vld [vmem:[%s3589_s11 + $0x20] sm:$0xff] }
 0x522   : > { %v2256_v56 = vpop.f32.mrb[20].mxu1 }
 0x523   : > { %v2257_v15 = vpop.f32.mrb[21].mxu1 }
 0x524   : > { %v2258_v17 = vadd.f32 %v2257_v15, %v2256_v56  ;;  %v2259_v10 = vpop.f32.mrb[22].mxu1  ;;  %v1822_v15 = vld [vmem:[%s3589_s11 + $0x30] sm:$0xff] }
 0x525   : > { %v2260_v19 = vpop.f32.mrb[23].mxu1  ;;  %1789 = vxpose.xlu0.b32.cont [6/16] %v1773_v13, 128 }
 0x526   : > { %v2261_v58 = vadd.f32 %v2260_v19, %v2259_v10  ;;  %v1780_v47 = vmul.f32 %v2258_v17, %v1764_v46 }
 0x528   : > { %v1781_v61 = vmul.f32 %v2261_v58, %v1765_v45 }
 0x529   : > { %1790 = vxpose.xlu0.b32.cont [7/16] %v1774_v59, 128 }
 0x52a   : > { %v2262_v16 = vpop.f32.mrb[24].mxu1 }
 0x52b   : > { %v2263_v60 = vpop.f32.mrb[25].mxu1 }
 0x52c   : > { %v2264_v32 = vadd.f32 %v2263_v60, %v2262_v16  ;;  %v2265_v33 = vpop.f32.mrb[26].mxu1  ;;  %v1826_v16 = vld [vmem:[%s3589_s11 + $0x50] sm:$0xff] }
 0x52d   : > { %v2266_v37 = vpop.f32.mrb[27].mxu1  ;;  %1791 = vxpose.xlu0.b32.cont [8/16] %v1775_v31, 128 }
 0x52e   : > { %v2267_v35 = vadd.f32 %v2266_v37, %v2265_v33  ;;  %v1782_v48 = vmul.f32 %v2264_v32, %v1766_v63  ;;  %v1827_v32 = vld [vmem:[%s3589_s11 + $0x58] sm:$0xff] }
 0x530   : > { %v1783_v3 = vmul.f32 %v2267_v35, %v1767_v26  ;;  %v1829_v35 = vld [vmem:[%s3589_s11 + $0x68] sm:$0xff]  ;;  %s3114_s11 = smov [#allocation21]  }
 0x531   : > { %1792 = vxpose.xlu0.b32.cont [9/16] %v1776_v38, 128  ;;  %s2958_s1 = sshll.u32 %s3114_s11, 4  ;;  %s2959_s1 = int_to_ptr.vmem [resolvable:$false] %s2958_s1 }
 0x532   : > { %s2960_s27 = scalar_lea.vmem %s2959_s1, 4096  ;;  %p2961_p7 = scmp.lt.s32.totalorder %s3935_s0, %s2959_s1 }
 0x533   : > { %p2962_p8 = scmp.lt.s32.totalorder %s2960_s27, %s2954_s17 }
 0x535   : > { %1793 = vxpose.xlu0.b32.cont [10/16] %v1777_v44, 128  ;;  %p2963_p0 = por %p2962_p8, %p2961_p7 }
 0x537   : > { %p2964_p13 = pnand %p2963_p0, %p2957_p11 }
 0x539   : > { %1794 = vxpose.xlu0.b32.cont [11/16] %v1778_v23, 128 }
 0x53d   : > { %1795 = vxpose.xlu0.b32.cont [12/16] %v1779_v57, 128 }
 0x541   : > { %1796 = vxpose.xlu0.b32.cont [13/16] %v1780_v47, 128 }
 0x545   : > { %1797 = vxpose.xlu0.b32.cont [14/16] %v1781_v61, 128 }
 0x549   : > { %1798 = vxpose.xlu0.b32.cont [15/16] %v1782_v48, 128 }
 0x54d   : > { %1799 = vxpose.xlu0.b32.end [16/16] %v1783_v3, 128 }
 0x591   : > { %v1800_v5 = vpop.trf.xlu0 }
 0x592   : > { %v1832_v27 = vadd.f32 %v1816_v50, %v1800_v5 }
 0x594   : > { %1848 = vst [vmem:[%s3611_s21] sm:$0xff] %v1832_v27 }
 0x595   : > { %v1801_v7 = vpop.trf.xlu0 }
 0x596   : > { %v1833_v0 = vadd.f32 %v1817_v29, %v1801_v7 }
 0x598   : > { %1849 = vst [vmem:[%s3611_s21 + $0x8] sm:$0xff] %v1833_v0 }
 0x599   : > { %v1802_v62 = vpop.trf.xlu0 }
 0x59a   : > { %v1834_v4 = vadd.f32 %v1818_v2, %v1802_v62 }
 0x59c   : > { %1850 = vst [vmem:[%s3611_s21 + $0x10] sm:$0xff] %v1834_v4 }
 0x59d   : > { %v1803_v52 = vpop.trf.xlu0 }
 0x59e   : > { %v1835_v53 = vadd.f32 %v1819_v6, %v1803_v52 }
 0x5a0   : > { %1851 = vst [vmem:[%s3611_s21 + $0x18] sm:$0xff] %v1835_v53 }
 0x5a1   : > { %v1804_v36 = vpop.trf.xlu0 }
 0x5a2   : > { %v1836_v11 = vadd.f32 %v1820_v9, %v1804_v36 }
 0x5a4   : > { %1852 = vst [vmem:[%s3611_s21 + $0x20] sm:$0xff] %v1836_v11 }
 0x5a5   : > { %v1805_v56 = vpop.trf.xlu0 }
 0x5a6   : > { %v1837_v13 = vadd.f32 %v1821_v54, %v1805_v56 }
 0x5a8   : > { %1853 = vst [vmem:[%s3611_s21 + $0x28] sm:$0xff] %v1837_v13 }
 0x5a9   : > { %v1806_v17 = vpop.trf.xlu0 }
 0x5aa   : > { %v1838_v10 = vadd.f32 %v1822_v15, %v1806_v17 }
 0x5ac   : > { %1854 = vst [vmem:[%s3611_s21 + $0x30] sm:$0xff] %v1838_v10 }
 0x5ad   : > { %v1807_v18 = vpop.trf.xlu0 }
 0x5ae   : > { %v1839_v19 = vadd.f32 %v1823_v12, %v1807_v18 }
 0x5b0   : > { %1855 = vst [vmem:[%s3611_s21 + $0x38] sm:$0xff] %v1839_v19 }
 0x5b1   : > { %v1808_v58 = vpop.trf.xlu0 }
 0x5b2   : > { %v1840_v59 = vadd.f32 %v1824_v22, %v1808_v58 }
 0x5b4   : > { %1856 = vst [vmem:[%s3611_s21 + $0x40] sm:$0xff] %v1840_v59 }
 0x5b5   : > { %v1809_v24 = vpop.trf.xlu0 }
 0x5b6   : > { %v1841_v28 = vadd.f32 %v1825_v14, %v1809_v24 }
 0x5b8   : > { %1857 = vst [vmem:[%s3611_s21 + $0x48] sm:$0xff] %v1841_v28 }
 0x5b9   : > { %v1810_v31 = vpop.trf.xlu0 }
 0x5ba   : > { %v1842_v60 = vadd.f32 %v1826_v16, %v1810_v31 }
 0x5bc   : > { %1858 = vst [vmem:[%s3611_s21 + $0x50] sm:$0xff] %v1842_v60 }
 0x5bd   : > { %v1811_v33 = vpop.trf.xlu0 }
 0x5be   : > { %v1843_v34 = vadd.f32 %v1827_v32, %v1811_v33 }
 0x5c0   : > { %1859 = vst [vmem:[%s3611_s21 + $0x58] sm:$0xff] %v1843_v34 }
 0x5c1   : > { %v1812_v37 = vpop.trf.xlu0 }
 0x5c2   : > { %v1844_v41 = vadd.f32 %v1828_v39, %v1812_v37 }
 0x5c4   : > { %1860 = vst [vmem:[%s3611_s21 + $0x60] sm:$0xff] %v1844_v41 }
 0x5c5   : > { %v1813_v38 = vpop.trf.xlu0 }
 0x5c6   : > { %v1845_v43 = vadd.f32 %v1829_v35, %v1813_v38 }
 0x5c8   : > { %1861 = vst [vmem:[%s3611_s21 + $0x68] sm:$0xff] %v1845_v43 }
 0x5c9   : > { %v1814_v42 = vpop.trf.xlu0 }
 0x5ca   : > { %v1846_v44 = vadd.f32 %v1830_v20, %v1814_v42 }
 0x5cc   : > { %1862 = vst [vmem:[%s3611_s21 + $0x70] sm:$0xff] %v1846_v44 }
 0x5cd   : > { %v1815_v21 = vpop.trf.xlu0 }
 0x5ce   : > { %v1847_v49 = vadd.f32 %v1831_v40, %v1815_v21 }
 0x5d0   : > { %1863 = vst [vmem:[%s3611_s21 + $0x78] sm:$0xff] %v1847_v49 }
 0x5d1   : > { %2967 = shalt.err (!%p2964_p13)
}
 0x5d2   : > { %s2968_s20 = scalar_lea.hbm %s3933_s28, 2048  ;;  %s2972_s18 = scalar_lea.hbm %s4089_s12, 8192 }
 0x5d3   : > { %p2969_p2 = scmp.ne.s32.totalorder %s3933_s28, %s2968_s20  ;;  %p2973_p12 = scmp.lt.u32.totalorder %s3933_s28, %s4089_s12 }
 0x5d4   : > { %p2974_p3 = scmp.lt.u32.totalorder %s2972_s18, %s2968_s20  ;;  %p2976_p10 = scmp.lt.u32.totalorder %s2968_s20, %s3933_s28 }
 0x5d5   : > { %p2970_p1 = pnand %p2969_p2, %p4090_p5 }
 0x5d6   : > { %p2975_p6 = por %p2974_p3, %p2973_p12 }
 0x5d7   : > { %p2971_p9 = pneg %p2970_p1 }
 0x5d8   : > { %p2977_p4 = por %p2976_p10, %p2975_p6 }
 0x5da   : > { %p2978_p11 = pnand %p2977_p4, %p2971_p9 }
 0x5dc   : > { %2981 = shalt.err (!%p2978_p11)
}
 0x5dd   : > { %s3115_s15 = smov 128   ;;  %s3116_s30 = smov 256  }
 0x5de   : > { %s3117_s17 = smov 8  }
 0x5df   : > { %2412 = dma.vmem_to_hbm [thread:$0]  (%p4090_p5), %s3935_s0, 2048, %s3933_s28, %s3940_s25, %s3115_s15, %s3116_s30, %s3117_s17  }
 0x5e0 PF: > { %s4091_s11 = sld [smem:[#allocation29_spill]]  ;;  %p2462_p7 = scmp.ge.s32.totalorder %s3096_s24, 2 }
 0x5e1   : > { %p4092_p8 = scmp.ne.s32.totalorder %s4067_s14, 0 }
 0x5e3   : > { %p2444_p0 = pnand %p2462_p7, %p4092_p8 }
 0x5e6   : > { %s1894_s1 = sand.u32 1, %s4091_s11  }
 0x5e7   : > { %s1895_s27 = scalar_lea.sflag [#allocation8], %s1894_s1 }
 0x5e8   : > { %3051 = dma.done.wait (!%p2444_p0), %s1895_s27, 2048  }
 0x5e9   : > { %3053 = vsyncadd (!%p2444_p0), %s1895_s27, 4294965248  ;;  %s33_s24 = sadd.s32 1, %s3096_s24   ;;  %s4093_s15 = sld [smem:[#allocation30_spill]] }
 0x5ea   : > { %p30_p13 = scmp.ge.s32.totalorder %s33_s24, 6   ;;  %s4094_s16 = sld [smem:[#allocation31_spill]] }
 0x5eb   : > { %s4095_s17 = smov %s3502_s3  ;;  %s4096_s18 = smov %s3072_s19 }
 0x5ec   : > { %s4097_s19 = smov %s3076_s9  ;;  %s4098_s9 = smov %s3446_s10 }
 0x5ed   : > { %s4099_s20 = smov %s3088_s22  ;;  %s4100_s21 = smov %s3092_s23 }
 0x5ee   : > { %s4101_s22 = smov %s4104_s26  ;;  %s4102_s23 = smov %s4108_s29 }
 0x5ef   :  { %32 = sbr.rel (!%p30_p13) target bundleno = 23 (0x17), region = 151 }
 0x5f6   :  { %1900 = vsyncpa [#allocation7], 1 }
 0x5f7   :  { %1902 = vsyncpa [#allocation7 + $0x1], 1 }
 0x5f8   :  { %1903 = vsyncpa [#allocation10], 1 }
 0x5f9   :  { %1905 = vsyncpa [#allocation10 + $0x1], 1 }
 0x5fa   :  { %1906 = vsyncpa [#allocation13], 1 }
 0x5fb   :  { %1907 = vsyncpa [#allocation16], 1 }
 0x5fc   :  { %1908 = vsyncpa [#allocation19], 1 }
 0x5fd   :  { %1909 = vsyncpa [#allocation8], 1 }
 0x5fe   :  { %1911 = vsyncpa [#allocation8 + $0x1], 1 }

</bundles_post_ra>
